<compile_context>
chip_gen: v6e
topology: v6e:2x2x1
jax: 0.10.0
libtpu: 0.0.40
codegen_flags: <defaults>
</compile_context>

<pallas_src>
import math

import jax
import jax.numpy as jnp
from jax.experimental import pallas as pl
from jax.experimental.pallas import tpu as pltpu

EPS = 1e-5  # torch.nn.LayerNorm default


def _layernorm(x2d, gamma, beta):
    # LayerNorm over the last axis in fp32 (matches the fp16-safe subclass).
    mu = jnp.mean(x2d, axis=-1, keepdims=True)
    var = jnp.mean(jnp.square(x2d - mu), axis=-1, keepdims=True)
    return (x2d - mu) * jax.lax.rsqrt(var + EPS) * gamma + beta


def _vmem_limit_bytes(default=48 * 1024 * 1024):
    """~75% of physical VMEM (64 MiB on v7x, 128 MiB on v5e/v6e), capped."""
    try:
        cap = int(pltpu.get_tpu_info().vmem_capacity_bytes)
        return max(32 * 1024 * 1024, min(cap * 3 // 4, 112 * 1024 * 1024))
    except Exception:
        return default


def _choose_block_batch(B, S):
    """Batch elements per grid step: fill MXU rows (Bt*S >= 256) but keep at
    least two grid steps when the batch allows (megacore / pipeline overlap)."""
    divisors = [d for d in range(1, B + 1) if B % d == 0]
    bt = next((d for d in divisors if d * S >= 256), B)
    if B // bt < 2:
        smaller = [d for d in divisors if B // d >= 2]
        if smaller:
            bt = smaller[-1]
    return bt


def _make_kernel(Bt, S, D, H, use_mask):
    Hd = D // H
    scale = 1.0 / math.sqrt(Hd)
    M = Bt * S

    def kernel(x_ref, ln1_g_ref, ln1_b_ref, wqkv_ref, bq_ref, bv_ref,
               wo_ref, bo_ref, ln2_g_ref, ln2_b_ref, wfc_ref, bfc_ref,
               wpj_ref, bpj_ref, *rest):
        if use_mask:
            mask_ref, o_ref, s_scr, ctx_scr = rest
        else:
            o_ref, s_scr, ctx_scr = rest
            mask_ref = None

        x = x_ref[...].reshape(M, D).astype(jnp.float32)        # (Bt*S, D)

        # ---- ln_1 (fp32) ----
        h = _layernorm(x, ln1_g_ref[...], ln1_b_ref[...])

        # ---- fused QKV projection: bf16 MXU operands, fp32 accumulation ----
        qkv = jnp.dot(h.astype(jnp.bfloat16), wqkv_ref[...],
                      preferred_element_type=jnp.float32)        # (Bt*S, 3D)

        bq = bq_ref[...]                                         # (1, D)
        bv = bv_ref[...]                                         # (1, D)

        # ---- multi-head self-attention ----
        # Static unrolled (batch, head) loop with static slices; the (S, S)
        # score data is funneled through ONE reused scratch so only a single
        # head's scores can be live at a time.
        # TODO(synk): for very long S, switch to a fori_loop with query tiling
        # (flash style) so the per-head temporaries stay O(TQ*S).
        for bb in range(Bt):
            r0, r1 = bb * S, (bb + 1) * S
            for hh in range(H):
                lo, hi = hh * Hd, (hh + 1) * Hd
                qh = (qkv[r0:r1, lo:hi] + bq[:, lo:hi]).astype(jnp.bfloat16)
                kh = qkv[r0:r1, D + lo:D + hi].astype(jnp.bfloat16)  # key bias cancels
                vh = (qkv[r0:r1, 2 * D + lo:2 * D + hi]
                      + bv[:, lo:hi]).astype(jnp.bfloat16)
                s = jnp.einsum('qd,kd->qk', qh, kh,
                               preferred_element_type=jnp.float32) * scale
                if use_mask:
                    s = s + mask_ref[...]
                s_scr[...] = s - jnp.max(s, axis=-1, keepdims=True)
                e = jnp.exp(s_scr[...])
                p = e * pl.reciprocal(jnp.sum(e, axis=-1, keepdims=True),
                                      approx=True)
                ctx_scr[r0:r1, lo:hi] = jnp.dot(
                    p.astype(jnp.bfloat16), vh,
                    preferred_element_type=jnp.float32).astype(jnp.bfloat16)

        # ---- ONE output projection over all heads (full K=D depth) ----
        attn = jnp.dot(ctx_scr[...], wo_ref[...],
                       preferred_element_type=jnp.float32) + bo_ref[...]

        # ---- first residual ----
        x = x + attn

        # ---- ln_2 + MLP with QuickGELU ----
        h2 = _layernorm(x, ln2_g_ref[...], ln2_b_ref[...]).astype(jnp.bfloat16)
        u = jnp.dot(h2, wfc_ref[...],
                    preferred_element_type=jnp.float32) + bfc_ref[...]
        u = u * jax.nn.sigmoid(1.702 * u)                        # QuickGELU
        m = jnp.dot(u.astype(jnp.bfloat16), wpj_ref[...],
                    preferred_element_type=jnp.float32) + bpj_ref[...]

        # ---- second residual ----
        o_ref[...] = (x + m).reshape(Bt, S, D).astype(o_ref.dtype)

    return kernel


def _forward_bsd(x_bsd, kp, n_head, attn_mask, single_buffer_weights):
    B, S, D = x_bsd.shape
    Bt = _choose_block_batch(B, S)
    nB = B // Bt
    use_mask = attn_mask is not None

    def resident(shape):
        nd = len(shape)
        imap = lambda b, _n=nd: (0,) * _n
        if single_buffer_weights:
            # Constant block index => never re-DMA'd; 1 buffer is enough.
            return pl.BlockSpec(shape, imap, pipeline_mode=pl.Buffered(1))
        return pl.BlockSpec(shape, imap)

    in_specs = [
        pl.BlockSpec((Bt, S, D), lambda b: (b, 0, 0)),   # activations
        resident((1, D)), resident((1, D)),              # ln_1 gamma/beta
        resident((D, 3 * D)),                            # fused W_qkv (bf16)
        resident((1, D)), resident((1, D)),              # b_q, b_v
        resident((D, D)), resident((1, D)),              # W_o, b_o
        resident((1, D)), resident((1, D)),              # ln_2 gamma/beta
        resident((D, 4 * D)), resident((1, 4 * D)),      # W_fc, b_fc
        resident((4 * D, D)), resident((1, D)),          # W_proj, b_proj
    ]
    args = [
        x_bsd.astype(jnp.float32),
        kp['ln1_g'], kp['ln1_b'],
        kp['wqkv'], kp['bq'], kp['bv'],
        kp['wo'], kp['bo'],
        kp['ln2_g'], kp['ln2_b'],
        kp['wfc'], kp['bfc'],
        kp['wpj'], kp['bpj'],
    ]
    if use_mask:
        in_specs.append(resident((S, S)))
        args.append(attn_mask.astype(jnp.float32))

    kernel = _make_kernel(Bt, S, D, n_head, use_mask)
    return pl.pallas_call(
        kernel,
        out_shape=jax.ShapeDtypeStruct((B, S, D), jnp.float32),
        grid_spec=pltpu.PrefetchScalarGridSpec(
            num_scalar_prefetch=0,
            grid=(nB,),
            in_specs=in_specs,
            out_specs=pl.BlockSpec((Bt, S, D), lambda b: (b, 0, 0)),
            scratch_shapes=[
                pltpu.VMEM((S, S), jnp.float32),            # reused score buf
                pltpu.VMEM((Bt * S, D), jnp.bfloat16),      # per-head context
            ],
        ),
        compiler_params=pltpu.CompilerParams(
            dimension_semantics=("parallel",),               # both TCs on v7x
            vmem_limit_bytes=_vmem_limit_bytes(),
        ),
    )(*args)


def residual_attention_block_bsd(x_bsd, kernel_params, n_head, attn_mask=None):
    """Batch-first (B, S, D) entry point -- no boundary transposes."""
    try:
        return _forward_bsd(x_bsd, kernel_params, n_head, attn_mask, True)
    except Exception:
        # pl.Buffered(1) unsupported on this jax build: fall back to the
        # default double-buffered weight pipeline (correct, more VMEM).
        return _forward_bsd(x_bsd, kernel_params, n_head, attn_mask, False)


def residual_attention_block(x_sbd, kernel_params, n_head, attn_mask=None):
    """Seq-first (S, B, D) drop-in wrapper matching nn.MultiheadAttention."""
    # TODO(synk): callers that can keep activations batch-first should use
    # residual_attention_block_bsd directly and skip these two HBM transposes.
    out = residual_attention_block_bsd(
        jnp.transpose(x_sbd, (1, 0, 2)), kernel_params, n_head, attn_mask)
    return jnp.transpose(out, (1, 0, 2))


def make_params(key, d_model, n_head):
    """Deterministic synthetic fp32 parameters ((in, out) weight layout)."""
    del n_head
    D = d_model
    ks = jax.random.split(key, 9)
    std = 0.02
    return {
        'ln1_g': jnp.ones((1, D), jnp.float32),
        'ln1_b': jnp.zeros((1, D), jnp.float32),
        'wq': std * jax.random.normal(ks[0], (D, D), jnp.float32),
        'wk': std * jax.random.normal(ks[1], (D, D), jnp.float32),
        'wv': std * jax.random.normal(ks[2], (D, D), jnp.float32),
        'bq': 0.01 * jax.random.normal(ks[3], (1, D), jnp.float32),
        # non-zero key bias: verifies that dropping it in the kernel is exact
        'bk': 0.01 * jax.random.normal(ks[8], (1, D), jnp.float32),
        'bv': jnp.zeros((1, D), jnp.float32),
        'wo': std * jax.random.normal(ks[4], (D, D), jnp.float32),
        'bo': jnp.zeros((1, D), jnp.float32),
        'ln2_g': jnp.ones((1, D), jnp.float32),
        'ln2_b': jnp.zeros((1, D), jnp.float32),
        'wfc': std * jax.random.normal(ks[5], (D, 4 * D), jnp.float32),
        'bfc': 0.01 * jax.random.normal(ks[6], (1, 4 * D), jnp.float32),
        'wpj': std * jax.random.normal(ks[7], (4 * D, D), jnp.float32),
        'bpj': jnp.zeros((1, D), jnp.float32),
    }


def prepare_kernel_params(params):
    """One-time weight packing: fused bf16 W_qkv, bf16 matmul weights.
    Done at parameter-prep time so it is NOT re-run on every forward call."""
    return {
        'ln1_g': params['ln1_g'], 'ln1_b': params['ln1_b'],
        'wqkv': jnp.concatenate([params['wq'], params['wk'], params['wv']],
                                axis=1).astype(jnp.bfloat16),
        'bq': params['bq'], 'bv': params['bv'],
        'wo': params['wo'].astype(jnp.bfloat16), 'bo': params['bo'],
        'ln2_g': params['ln2_g'], 'ln2_b': params['ln2_b'],
        'wfc': params['wfc'].astype(jnp.bfloat16), 'bfc': params['bfc'],
        'wpj': params['wpj'].astype(jnp.bfloat16), 'bpj': params['bpj'],
    }


def reference_forward_bsd(x_bsd, params, n_head, attn_mask=None):
    """Pure-JAX fp32 reference mirroring the PyTorch module (batch-first)."""
    B, S, D = x_bsd.shape
    Hd = D // n_head
    x = x_bsd.astype(jnp.float32)

    def ln(t, g, b):
        mu = jnp.mean(t, axis=-1, keepdims=True)
        var = jnp.mean(jnp.square(t - mu), axis=-1, keepdims=True)
        return (t - mu) * jax.lax.rsqrt(var + EPS) * g + b

    h = ln(x, params['ln1_g'], params['ln1_b'])
    q = h @ params['wq'] + params['bq']
    k = h @ params['wk'] + params['bk']
    v = h @ params['wv'] + params['bv']

    def split_heads(t):  # (B, S, D) -> (B, H, S, Hd)
        return jnp.transpose(t.reshape(B, S, n_head, Hd), (0, 2, 1, 3))

    qh, kh, vh = split_heads(q), split_heads(k), split_heads(v)
    s = jnp.einsum('bhqd,bhkd->bhqk', qh, kh) / math.sqrt(Hd)
    if attn_mask is not None:
        s = s + attn_mask
    p = jax.nn.softmax(s, axis=-1)
    o = jnp.einsum('bhqk,bhkd->bhqd', p, vh)
    o = jnp.transpose(o, (0, 2, 1, 3)).reshape(B, S, D)
    o = o @ params['wo'] + params['bo']

    x = x + o
    h2 = ln(x, params['ln2_g'], params['ln2_b'])
    u = h2 @ params['wfc'] + params['bfc']
    u = u * jax.nn.sigmoid(1.702 * u)
    x = x + (u @ params['wpj'] + params['bpj'])
    return x


if __name__ == "__main__":
    SEQ, BATCH, D_MODEL, N_HEAD = 8, 2, 32, 4

    key = jax.random.PRNGKey(0)
    kx, kp = jax.random.split(key)
    params = make_params(kp, D_MODEL, N_HEAD)
    kparams = prepare_kernel_params(params)          # pack/cast weights ONCE

    x_bsd = jax.random.normal(kx, (BATCH, SEQ, D_MODEL), jnp.float32)

    # 1) unmasked, batch-first production path (no boundary transposes)
    out = jax.block_until_ready(
        residual_attention_block_bsd(x_bsd, kparams, N_HEAD))
    ref = reference_forward_bsd(x_bsd, params, N_HEAD)
    assert out.shape == (BATCH, SEQ, D_MODEL)
    max_err = float(jnp.max(jnp.abs(out - ref)))
    # bf16 matmul operands + approx softmax reciprocal -> loose tolerance.
    assert jnp.allclose(out, ref, rtol=2e-2, atol=2e-2), f"max abs err {max_err}"

    # 2) causal additive mask (CLIP text tower style)
    causal = jnp.where(jnp.tril(jnp.ones((SEQ, SEQ), dtype=bool)),
                       0.0, -1e9).astype(jnp.float32)
    out_m = jax.block_until_ready(
        residual_attention_block_bsd(x_bsd, kparams, N_HEAD, attn_mask=causal))
    ref_m = reference_forward_bsd(x_bsd, params, N_HEAD, attn_mask=causal)
    max_err_m = float(jnp.max(jnp.abs(out_m - ref_m)))
    assert jnp.allclose(out_m, ref_m, rtol=2e-2, atol=2e-2), (
        f"masked max abs err {max_err_m}")

    # 3) seq-first drop-in wrapper agrees with the batch-first path
    x_sbd = jnp.transpose(x_bsd, (1, 0, 2))
    out_sbd = jax.block_until_ready(
        residual_attention_block(x_sbd, kparams, N_HEAD))
    assert jnp.allclose(out_sbd, jnp.transpose(out, (1, 0, 2)),
                        rtol=1e-5, atol=1e-5)

    print("KERNEL_OK")
</pallas_src>

<mosaic_0001>
module attributes {stable_mosaic.version = 11 : i64} {
  func.func @kernel(%arg0: i32, %arg1: memref<1x8x32xf32, #tpu.memory_space<vmem>>, %arg2: memref<1x32xf32, #tpu.memory_space<vmem>>, %arg3: memref<1x32xf32, #tpu.memory_space<vmem>>, %arg4: memref<32x96xbf16, #tpu.memory_space<vmem>>, %arg5: memref<1x32xf32, #tpu.memory_space<vmem>>, %arg6: memref<1x32xf32, #tpu.memory_space<vmem>>, %arg7: memref<32x32xbf16, #tpu.memory_space<vmem>>, %arg8: memref<1x32xf32, #tpu.memory_space<vmem>>, %arg9: memref<1x32xf32, #tpu.memory_space<vmem>>, %arg10: memref<1x32xf32, #tpu.memory_space<vmem>>, %arg11: memref<32x128xbf16, #tpu.memory_space<vmem>>, %arg12: memref<1x128xf32, #tpu.memory_space<vmem>>, %arg13: memref<128x32xbf16, #tpu.memory_space<vmem>>, %arg14: memref<1x32xf32, #tpu.memory_space<vmem>>, %arg15: memref<1x8x32xf32, #tpu.memory_space<vmem>>, %arg16: memref<8x8xf32, #tpu.memory_space<vmem>>, %arg17: memref<8x32xbf16, #tpu.memory_space<vmem>>) attributes {dimension_semantics = [#tpu.dimension_semantics<parallel>], iteration_bounds = array<i64: 2>, scalar_prefetch = 0 : i64, scratch_operands = 2 : i64, tpu.core_type = #tpu.core_type<tc>, window_params = [{transform_indices = @transform_0, window_bounds = array<i64: 1, 8, 32>}, {pipeline_mode = #tpu.pipeline_mode<synchronous>, transform_indices = @transform_1, window_bounds = array<i64: 1, 32>}, {pipeline_mode = #tpu.pipeline_mode<synchronous>, transform_indices = @transform_2, window_bounds = array<i64: 1, 32>}, {pipeline_mode = #tpu.pipeline_mode<synchronous>, transform_indices = @transform_3, window_bounds = array<i64: 32, 96>}, {pipeline_mode = #tpu.pipeline_mode<synchronous>, transform_indices = @transform_4, window_bounds = array<i64: 1, 32>}, {pipeline_mode = #tpu.pipeline_mode<synchronous>, transform_indices = @transform_5, window_bounds = array<i64: 1, 32>}, {pipeline_mode = #tpu.pipeline_mode<synchronous>, transform_indices = @transform_6, window_bounds = array<i64: 32, 32>}, {pipeline_mode = #tpu.pipeline_mode<synchronous>, transform_indices = @transform_7, window_bounds = array<i64: 1, 32>}, {pipeline_mode = #tpu.pipeline_mode<synchronous>, transform_indices = @transform_8, window_bounds = array<i64: 1, 32>}, {pipeline_mode = #tpu.pipeline_mode<synchronous>, transform_indices = @transform_9, window_bounds = array<i64: 1, 32>}, {pipeline_mode = #tpu.pipeline_mode<synchronous>, transform_indices = @transform_10, window_bounds = array<i64: 32, 128>}, {pipeline_mode = #tpu.pipeline_mode<synchronous>, transform_indices = @transform_11, window_bounds = array<i64: 1, 128>}, {pipeline_mode = #tpu.pipeline_mode<synchronous>, transform_indices = @transform_12, window_bounds = array<i64: 128, 32>}, {pipeline_mode = #tpu.pipeline_mode<synchronous>, transform_indices = @transform_13, window_bounds = array<i64: 1, 32>}, {transform_indices = @transform_14, window_bounds = array<i64: 1, 8, 32>}]} {
    %c0 = arith.constant 0 : index
    %c0_0 = arith.constant 0 : index
    %c0_1 = arith.constant 0 : index
    %0 = vector.load %arg1[%c0, %c0_0, %c0_1] : memref<1x8x32xf32, #tpu.memory_space<vmem>>, vector<1x8x32xf32>
    %1 = vector.shape_cast %0 : vector<1x8x32xf32> to vector<8x32xf32>
    %c0_2 = arith.constant 0 : index
    %c0_3 = arith.constant 0 : index
    %2 = vector.load %arg2[%c0_2, %c0_3] : memref<1x32xf32, #tpu.memory_space<vmem>>, vector<1x32xf32>
    %c0_4 = arith.constant 0 : index
    %c0_5 = arith.constant 0 : index
    %3 = vector.load %arg3[%c0_4, %c0_5] : memref<1x32xf32, #tpu.memory_space<vmem>>, vector<1x32xf32>
    %cst = arith.constant dense<0.000000e+00> : vector<8xf32>
    %4 = vector.multi_reduction <add>, %1, %cst [1] : vector<8x32xf32> to vector<8xf32>
    %5 = vector.shape_cast %4 : vector<8xf32> to vector<8x1xf32>
    %cst_6 = arith.constant 3.200000e+01 : f32
    %6 = vector.broadcast %cst_6 : f32 to vector<8x1xf32>
    %7 = arith.divf %5, %6 : vector<8x1xf32>
    %8 = vector.broadcast %7 : vector<8x1xf32> to vector<8x32xf32>
    %9 = arith.subf %1, %8 : vector<8x32xf32>
    %10 = arith.mulf %9, %9 : vector<8x32xf32>
    %cst_7 = arith.constant dense<0.000000e+00> : vector<8xf32>
    %11 = vector.multi_reduction <add>, %10, %cst_7 [1] : vector<8x32xf32> to vector<8xf32>
    %12 = vector.shape_cast %11 : vector<8xf32> to vector<8x1xf32>
    %cst_8 = arith.constant 3.200000e+01 : f32
    %13 = vector.broadcast %cst_8 : f32 to vector<8x1xf32>
    %14 = arith.divf %12, %13 : vector<8x1xf32>
    %15 = vector.broadcast %7 : vector<8x1xf32> to vector<8x32xf32>
    %16 = arith.subf %1, %15 : vector<8x32xf32>
    %cst_9 = arith.constant 9.99999974E-6 : f32
    %17 = vector.broadcast %cst_9 : f32 to vector<8x1xf32>
    %18 = arith.addf %14, %17 : vector<8x1xf32>
    %19 = math.rsqrt %18 : vector<8x1xf32>
    %20 = vector.broadcast %19 : vector<8x1xf32> to vector<8x32xf32>
    %21 = arith.mulf %16, %20 : vector<8x32xf32>
    %22 = vector.broadcast %2 : vector<1x32xf32> to vector<8x32xf32>
    %23 = arith.mulf %21, %22 : vector<8x32xf32>
    %24 = vector.broadcast %3 : vector<1x32xf32> to vector<8x32xf32>
    %25 = arith.addf %23, %24 : vector<8x32xf32>
    %26 = arith.truncf %25 : vector<8x32xf32> to vector<8x32xbf16>
    %c0_10 = arith.constant 0 : index
    %c0_11 = arith.constant 0 : index
    %27 = vector.load %arg4[%c0_10, %c0_11] : memref<32x96xbf16, #tpu.memory_space<vmem>>, vector<32x96xbf16>
    %cst_12 = arith.constant dense<0.000000e+00> : vector<8x96xf32>
    %28 = tpu.matmul %26, %27, %cst_12 {dimension_numbers = #tpu.dot_dimension_numbers<[1], [0], [0], [1], [0, 0, 1, 1], [], []>} : vector<8x32xbf16>, vector<32x96xbf16>, vector<8x96xf32> -> vector<8x96xf32>
    %c0_13 = arith.constant 0 : index
    %c0_14 = arith.constant 0 : index
    %29 = vector.load %arg5[%c0_13, %c0_14] : memref<1x32xf32, #tpu.memory_space<vmem>>, vector<1x32xf32>
    %c0_15 = arith.constant 0 : index
    %c0_16 = arith.constant 0 : index
    %30 = vector.load %arg6[%c0_15, %c0_16] : memref<1x32xf32, #tpu.memory_space<vmem>>, vector<1x32xf32>
    %31 = vector.extract_strided_slice %28 {offsets = [0, 0], sizes = [8, 8], strides = [1, 1]} : vector<8x96xf32> to vector<8x8xf32>
    %32 = vector.extract_strided_slice %29 {offsets = [0, 0], sizes = [1, 8], strides = [1, 1]} : vector<1x32xf32> to vector<1x8xf32>
    %33 = vector.broadcast %32 : vector<1x8xf32> to vector<8x8xf32>
    %34 = arith.addf %31, %33 : vector<8x8xf32>
    %35 = arith.truncf %34 : vector<8x8xf32> to vector<8x8xbf16>
    %36 = vector.extract_strided_slice %28 {offsets = [0, 32], sizes = [8, 8], strides = [1, 1]} : vector<8x96xf32> to vector<8x8xf32>
    %37 = arith.truncf %36 : vector<8x8xf32> to vector<8x8xbf16>
    %38 = vector.extract_strided_slice %28 {offsets = [0, 64], sizes = [8, 8], strides = [1, 1]} : vector<8x96xf32> to vector<8x8xf32>
    %39 = vector.extract_strided_slice %30 {offsets = [0, 0], sizes = [1, 8], strides = [1, 1]} : vector<1x32xf32> to vector<1x8xf32>
    %40 = vector.broadcast %39 : vector<1x8xf32> to vector<8x8xf32>
    %41 = arith.addf %38, %40 : vector<8x8xf32>
    %42 = arith.truncf %41 : vector<8x8xf32> to vector<8x8xbf16>
    "tpu.trace_start"() <{level = 10 : i32, message = "qd,kd->qk"}> : () -> ()
    %cst_17 = arith.constant dense<0.000000e+00> : vector<8x8xf32>
    %43 = tpu.matmul %35, %37, %cst_17 {dimension_numbers = #tpu.dot_dimension_numbers<[1], [1], [0], [0], [0, 0, 1, 0], [], []>} : vector<8x8xbf16>, vector<8x8xbf16>, vector<8x8xf32> -> vector<8x8xf32>
    "tpu.trace_stop"() : () -> ()
    %cst_18 = arith.constant 0.353553385 : f32
    %44 = vector.broadcast %cst_18 : f32 to vector<8x8xf32>
    %45 = arith.mulf %43, %44 : vector<8x8xf32>
    %cst_19 = arith.constant dense<0xFF800000> : vector<8xf32>
    %46 = vector.multi_reduction <maximumf>, %45, %cst_19 [1] : vector<8x8xf32> to vector<8xf32>
    %47 = vector.shape_cast %46 : vector<8xf32> to vector<8x1xf32>
    %48 = vector.broadcast %47 : vector<8x1xf32> to vector<8x8xf32>
    %49 = arith.subf %45, %48 : vector<8x8xf32>
    %c0_20 = arith.constant 0 : index
    %c0_21 = arith.constant 0 : index
    %50 = vector.load %arg16[%c0_20, %c0_21] : memref<8x8xf32, #tpu.memory_space<vmem>>, vector<8x8xf32>
    tpu.vector_store %arg16[%c0_20, %c0_21], %49 {strides = array<i32>} : memref<8x8xf32, #tpu.memory_space<vmem>>, vector<8x8xf32>,
    %c0_22 = arith.constant 0 : index
    %c0_23 = arith.constant 0 : index
    %51 = vector.load %arg16[%c0_22, %c0_23] : memref<8x8xf32, #tpu.memory_space<vmem>>, vector<8x8xf32>
    %52 = math.exp %51 : vector<8x8xf32>
    %cst_24 = arith.constant dense<0.000000e+00> : vector<8xf32>
    %53 = vector.multi_reduction <add>, %52, %cst_24 [1] : vector<8x8xf32> to vector<8xf32>
    %54 = vector.shape_cast %53 : vector<8xf32> to vector<8x1xf32>
    %55 = tpu.reciprocal %54 {approx = true} : vector<8x1xf32> -> vector<8x1xf32>
    %56 = vector.broadcast %55 : vector<8x1xf32> to vector<8x8xf32>
    %57 = arith.mulf %52, %56 : vector<8x8xf32>
    %58 = arith.truncf %57 : vector<8x8xf32> to vector<8x8xbf16>
    %cst_25 = arith.constant dense<0.000000e+00> : vector<8x8xf32>
    %59 = tpu.matmul %58, %42, %cst_25 {dimension_numbers = #tpu.dot_dimension_numbers<[1], [0], [0], [1], [0, 0, 1, 1], [], []>} : vector<8x8xbf16>, vector<8x8xbf16>, vector<8x8xf32> -> vector<8x8xf32>
    %60 = arith.truncf %59 : vector<8x8xf32> to vector<8x8xbf16>
    %c0_26 = arith.constant 0 : index
    %c0_27 = arith.constant 0 : index
    %61 = vector.load %arg17[%c0_26, %c0_27] : memref<8x32xbf16, #tpu.memory_space<vmem>>, vector<8x8xbf16>
    tpu.vector_store %arg17[%c0_26, %c0_27], %60 {strides = array<i32>} : memref<8x32xbf16, #tpu.memory_space<vmem>>, vector<8x8xbf16>,
    %62 = vector.extract_strided_slice %28 {offsets = [0, 8], sizes = [8, 8], strides = [1, 1]} : vector<8x96xf32> to vector<8x8xf32>
    %63 = vector.extract_strided_slice %29 {offsets = [0, 8], sizes = [1, 8], strides = [1, 1]} : vector<1x32xf32> to vector<1x8xf32>
    %64 = vector.broadcast %63 : vector<1x8xf32> to vector<8x8xf32>
    %65 = arith.addf %62, %64 : vector<8x8xf32>
    %66 = arith.truncf %65 : vector<8x8xf32> to vector<8x8xbf16>
    %67 = vector.extract_strided_slice %28 {offsets = [0, 40], sizes = [8, 8], strides = [1, 1]} : vector<8x96xf32> to vector<8x8xf32>
    %68 = arith.truncf %67 : vector<8x8xf32> to vector<8x8xbf16>
    %69 = vector.extract_strided_slice %28 {offsets = [0, 72], sizes = [8, 8], strides = [1, 1]} : vector<8x96xf32> to vector<8x8xf32>
    %70 = vector.extract_strided_slice %30 {offsets = [0, 8], sizes = [1, 8], strides = [1, 1]} : vector<1x32xf32> to vector<1x8xf32>
    %71 = vector.broadcast %70 : vector<1x8xf32> to vector<8x8xf32>
    %72 = arith.addf %69, %71 : vector<8x8xf32>
    %73 = arith.truncf %72 : vector<8x8xf32> to vector<8x8xbf16>
    "tpu.trace_start"() <{level = 10 : i32, message = "qd,kd->qk"}> : () -> ()
    %cst_28 = arith.constant dense<0.000000e+00> : vector<8x8xf32>
    %74 = tpu.matmul %66, %68, %cst_28 {dimension_numbers = #tpu.dot_dimension_numbers<[1], [1], [0], [0], [0, 0, 1, 0], [], []>} : vector<8x8xbf16>, vector<8x8xbf16>, vector<8x8xf32> -> vector<8x8xf32>
    "tpu.trace_stop"() : () -> ()
    %cst_29 = arith.constant 0.353553385 : f32
    %75 = vector.broadcast %cst_29 : f32 to vector<8x8xf32>
    %76 = arith.mulf %74, %75 : vector<8x8xf32>
    %cst_30 = arith.constant dense<0xFF800000> : vector<8xf32>
    %77 = vector.multi_reduction <maximumf>, %76, %cst_30 [1] : vector<8x8xf32> to vector<8xf32>
    %78 = vector.shape_cast %77 : vector<8xf32> to vector<8x1xf32>
    %79 = vector.broadcast %78 : vector<8x1xf32> to vector<8x8xf32>
    %80 = arith.subf %76, %79 : vector<8x8xf32>
    %c0_31 = arith.constant 0 : index
    %c0_32 = arith.constant 0 : index
    %81 = vector.load %arg16[%c0_31, %c0_32] : memref<8x8xf32, #tpu.memory_space<vmem>>, vector<8x8xf32>
    tpu.vector_store %arg16[%c0_31, %c0_32], %80 {strides = array<i32>} : memref<8x8xf32, #tpu.memory_space<vmem>>, vector<8x8xf32>,
    %c0_33 = arith.constant 0 : index
    %c0_34 = arith.constant 0 : index
    %82 = vector.load %arg16[%c0_33, %c0_34] : memref<8x8xf32, #tpu.memory_space<vmem>>, vector<8x8xf32>
    %83 = math.exp %82 : vector<8x8xf32>
    %cst_35 = arith.constant dense<0.000000e+00> : vector<8xf32>
    %84 = vector.multi_reduction <add>, %83, %cst_35 [1] : vector<8x8xf32> to vector<8xf32>
    %85 = vector.shape_cast %84 : vector<8xf32> to vector<8x1xf32>
    %86 = tpu.reciprocal %85 {approx = true} : vector<8x1xf32> -> vector<8x1xf32>
    %87 = vector.broadcast %86 : vector<8x1xf32> to vector<8x8xf32>
    %88 = arith.mulf %83, %87 : vector<8x8xf32>
    %89 = arith.truncf %88 : vector<8x8xf32> to vector<8x8xbf16>
    %cst_36 = arith.constant dense<0.000000e+00> : vector<8x8xf32>
    %90 = tpu.matmul %89, %73, %cst_36 {dimension_numbers = #tpu.dot_dimension_numbers<[1], [0], [0], [1], [0, 0, 1, 1], [], []>} : vector<8x8xbf16>, vector<8x8xbf16>, vector<8x8xf32> -> vector<8x8xf32>
    %91 = arith.truncf %90 : vector<8x8xf32> to vector<8x8xbf16>
    %c0_37 = arith.constant 0 : index
    %c8 = arith.constant 8 : index
    %92 = vector.load %arg17[%c0_37, %c8] : memref<8x32xbf16, #tpu.memory_space<vmem>>, vector<8x8xbf16>
    tpu.vector_store %arg17[%c0_37, %c8], %91 {strides = array<i32>} : memref<8x32xbf16, #tpu.memory_space<vmem>>, vector<8x8xbf16>,
    %93 = vector.extract_strided_slice %28 {offsets = [0, 16], sizes = [8, 8], strides = [1, 1]} : vector<8x96xf32> to vector<8x8xf32>
    %94 = vector.extract_strided_slice %29 {offsets = [0, 16], sizes = [1, 8], strides = [1, 1]} : vector<1x32xf32> to vector<1x8xf32>
    %95 = vector.broadcast %94 : vector<1x8xf32> to vector<8x8xf32>
    %96 = arith.addf %93, %95 : vector<8x8xf32>
    %97 = arith.truncf %96 : vector<8x8xf32> to vector<8x8xbf16>
    %98 = vector.extract_strided_slice %28 {offsets = [0, 48], sizes = [8, 8], strides = [1, 1]} : vector<8x96xf32> to vector<8x8xf32>
    %99 = arith.truncf %98 : vector<8x8xf32> to vector<8x8xbf16>
    %100 = vector.extract_strided_slice %28 {offsets = [0, 80], sizes = [8, 8], strides = [1, 1]} : vector<8x96xf32> to vector<8x8xf32>
    %101 = vector.extract_strided_slice %30 {offsets = [0, 16], sizes = [1, 8], strides = [1, 1]} : vector<1x32xf32> to vector<1x8xf32>
    %102 = vector.broadcast %101 : vector<1x8xf32> to vector<8x8xf32>
    %103 = arith.addf %100, %102 : vector<8x8xf32>
    %104 = arith.truncf %103 : vector<8x8xf32> to vector<8x8xbf16>
    "tpu.trace_start"() <{level = 10 : i32, message = "qd,kd->qk"}> : () -> ()
    %cst_38 = arith.constant dense<0.000000e+00> : vector<8x8xf32>
    %105 = tpu.matmul %97, %99, %cst_38 {dimension_numbers = #tpu.dot_dimension_numbers<[1], [1], [0], [0], [0, 0, 1, 0], [], []>} : vector<8x8xbf16>, vector<8x8xbf16>, vector<8x8xf32> -> vector<8x8xf32>
    "tpu.trace_stop"() : () -> ()
    %cst_39 = arith.constant 0.353553385 : f32
    %106 = vector.broadcast %cst_39 : f32 to vector<8x8xf32>
    %107 = arith.mulf %105, %106 : vector<8x8xf32>
    %cst_40 = arith.constant dense<0xFF800000> : vector<8xf32>
    %108 = vector.multi_reduction <maximumf>, %107, %cst_40 [1] : vector<8x8xf32> to vector<8xf32>
    %109 = vector.shape_cast %108 : vector<8xf32> to vector<8x1xf32>
    %110 = vector.broadcast %109 : vector<8x1xf32> to vector<8x8xf32>
    %111 = arith.subf %107, %110 : vector<8x8xf32>
    %c0_41 = arith.constant 0 : index
    %c0_42 = arith.constant 0 : index
    %112 = vector.load %arg16[%c0_41, %c0_42] : memref<8x8xf32, #tpu.memory_space<vmem>>, vector<8x8xf32>
    tpu.vector_store %arg16[%c0_41, %c0_42], %111 {strides = array<i32>} : memref<8x8xf32, #tpu.memory_space<vmem>>, vector<8x8xf32>,
    %c0_43 = arith.constant 0 : index
    %c0_44 = arith.constant 0 : index
    %113 = vector.load %arg16[%c0_43, %c0_44] : memref<8x8xf32, #tpu.memory_space<vmem>>, vector<8x8xf32>
    %114 = math.exp %113 : vector<8x8xf32>
    %cst_45 = arith.constant dense<0.000000e+00> : vector<8xf32>
    %115 = vector.multi_reduction <add>, %114, %cst_45 [1] : vector<8x8xf32> to vector<8xf32>
    %116 = vector.shape_cast %115 : vector<8xf32> to vector<8x1xf32>
    %117 = tpu.reciprocal %116 {approx = true} : vector<8x1xf32> -> vector<8x1xf32>
    %118 = vector.broadcast %117 : vector<8x1xf32> to vector<8x8xf32>
    %119 = arith.mulf %114, %118 : vector<8x8xf32>
    %120 = arith.truncf %119 : vector<8x8xf32> to vector<8x8xbf16>
    %cst_46 = arith.constant dense<0.000000e+00> : vector<8x8xf32>
    %121 = tpu.matmul %120, %104, %cst_46 {dimension_numbers = #tpu.dot_dimension_numbers<[1], [0], [0], [1], [0, 0, 1, 1], [], []>} : vector<8x8xbf16>, vector<8x8xbf16>, vector<8x8xf32> -> vector<8x8xf32>
    %122 = arith.truncf %121 : vector<8x8xf32> to vector<8x8xbf16>
    %c0_47 = arith.constant 0 : index
    %c16 = arith.constant 16 : index
    %123 = vector.load %arg17[%c0_47, %c16] : memref<8x32xbf16, #tpu.memory_space<vmem>>, vector<8x8xbf16>
    tpu.vector_store %arg17[%c0_47, %c16], %122 {strides = array<i32>} : memref<8x32xbf16, #tpu.memory_space<vmem>>, vector<8x8xbf16>,
    %124 = vector.extract_strided_slice %28 {offsets = [0, 24], sizes = [8, 8], strides = [1, 1]} : vector<8x96xf32> to vector<8x8xf32>
    %125 = vector.extract_strided_slice %29 {offsets = [0, 24], sizes = [1, 8], strides = [1, 1]} : vector<1x32xf32> to vector<1x8xf32>
    %126 = vector.broadcast %125 : vector<1x8xf32> to vector<8x8xf32>
    %127 = arith.addf %124, %126 : vector<8x8xf32>
    %128 = arith.truncf %127 : vector<8x8xf32> to vector<8x8xbf16>
    %129 = vector.extract_strided_slice %28 {offsets = [0, 56], sizes = [8, 8], strides = [1, 1]} : vector<8x96xf32> to vector<8x8xf32>
    %130 = arith.truncf %129 : vector<8x8xf32> to vector<8x8xbf16>
    %131 = vector.extract_strided_slice %28 {offsets = [0, 88], sizes = [8, 8], strides = [1, 1]} : vector<8x96xf32> to vector<8x8xf32>
    %132 = vector.extract_strided_slice %30 {offsets = [0, 24], sizes = [1, 8], strides = [1, 1]} : vector<1x32xf32> to vector<1x8xf32>
    %133 = vector.broadcast %132 : vector<1x8xf32> to vector<8x8xf32>
    %134 = arith.addf %131, %133 : vector<8x8xf32>
    %135 = arith.truncf %134 : vector<8x8xf32> to vector<8x8xbf16>
    "tpu.trace_start"() <{level = 10 : i32, message = "qd,kd->qk"}> : () -> ()
    %cst_48 = arith.constant dense<0.000000e+00> : vector<8x8xf32>
    %136 = tpu.matmul %128, %130, %cst_48 {dimension_numbers = #tpu.dot_dimension_numbers<[1], [1], [0], [0], [0, 0, 1, 0], [], []>} : vector<8x8xbf16>, vector<8x8xbf16>, vector<8x8xf32> -> vector<8x8xf32>
    "tpu.trace_stop"() : () -> ()
    %cst_49 = arith.constant 0.353553385 : f32
    %137 = vector.broadcast %cst_49 : f32 to vector<8x8xf32>
    %138 = arith.mulf %136, %137 : vector<8x8xf32>
    %cst_50 = arith.constant dense<0xFF800000> : vector<8xf32>
    %139 = vector.multi_reduction <maximumf>, %138, %cst_50 [1] : vector<8x8xf32> to vector<8xf32>
    %140 = vector.shape_cast %139 : vector<8xf32> to vector<8x1xf32>
    %141 = vector.broadcast %140 : vector<8x1xf32> to vector<8x8xf32>
    %142 = arith.subf %138, %141 : vector<8x8xf32>
    %c0_51 = arith.constant 0 : index
    %c0_52 = arith.constant 0 : index
    %143 = vector.load %arg16[%c0_51, %c0_52] : memref<8x8xf32, #tpu.memory_space<vmem>>, vector<8x8xf32>
    tpu.vector_store %arg16[%c0_51, %c0_52], %142 {strides = array<i32>} : memref<8x8xf32, #tpu.memory_space<vmem>>, vector<8x8xf32>,
    %c0_53 = arith.constant 0 : index
    %c0_54 = arith.constant 0 : index
    %144 = vector.load %arg16[%c0_53, %c0_54] : memref<8x8xf32, #tpu.memory_space<vmem>>, vector<8x8xf32>
    %145 = math.exp %144 : vector<8x8xf32>
    %cst_55 = arith.constant dense<0.000000e+00> : vector<8xf32>
    %146 = vector.multi_reduction <add>, %145, %cst_55 [1] : vector<8x8xf32> to vector<8xf32>
    %147 = vector.shape_cast %146 : vector<8xf32> to vector<8x1xf32>
    %148 = tpu.reciprocal %147 {approx = true} : vector<8x1xf32> -> vector<8x1xf32>
    %149 = vector.broadcast %148 : vector<8x1xf32> to vector<8x8xf32>
    %150 = arith.mulf %145, %149 : vector<8x8xf32>
    %151 = arith.truncf %150 : vector<8x8xf32> to vector<8x8xbf16>
    %cst_56 = arith.constant dense<0.000000e+00> : vector<8x8xf32>
    %152 = tpu.matmul %151, %135, %cst_56 {dimension_numbers = #tpu.dot_dimension_numbers<[1], [0], [0], [1], [0, 0, 1, 1], [], []>} : vector<8x8xbf16>, vector<8x8xbf16>, vector<8x8xf32> -> vector<8x8xf32>
    %153 = arith.truncf %152 : vector<8x8xf32> to vector<8x8xbf16>
    %c0_57 = arith.constant 0 : index
    %c24 = arith.constant 24 : index
    %154 = vector.load %arg17[%c0_57, %c24] : memref<8x32xbf16, #tpu.memory_space<vmem>>, vector<8x8xbf16>
    tpu.vector_store %arg17[%c0_57, %c24], %153 {strides = array<i32>} : memref<8x32xbf16, #tpu.memory_space<vmem>>, vector<8x8xbf16>,
    %c0_58 = arith.constant 0 : index
    %c0_59 = arith.constant 0 : index
    %155 = vector.load %arg17[%c0_58, %c0_59] : memref<8x32xbf16, #tpu.memory_space<vmem>>, vector<8x32xbf16>
    %c0_60 = arith.constant 0 : index
    %c0_61 = arith.constant 0 : index
    %156 = vector.load %arg7[%c0_60, %c0_61] : memref<32x32xbf16, #tpu.memory_space<vmem>>, vector<32x32xbf16>
    %cst_62 = arith.constant dense<0.000000e+00> : vector<8x32xf32>
    %157 = tpu.matmul %155, %156, %cst_62 {dimension_numbers = #tpu.dot_dimension_numbers<[1], [0], [0], [1], [0, 0, 1, 1], [], []>} : vector<8x32xbf16>, vector<32x32xbf16>, vector<8x32xf32> -> vector<8x32xf32>
    %c0_63 = arith.constant 0 : index
    %c0_64 = arith.constant 0 : index
    %158 = vector.load %arg8[%c0_63, %c0_64] : memref<1x32xf32, #tpu.memory_space<vmem>>, vector<1x32xf32>
    %159 = vector.broadcast %158 : vector<1x32xf32> to vector<8x32xf32>
    %160 = arith.addf %157, %159 : vector<8x32xf32>
    %161 = arith.addf %1, %160 : vector<8x32xf32>
    %c0_65 = arith.constant 0 : index
    %c0_66 = arith.constant 0 : index
    %162 = vector.load %arg9[%c0_65, %c0_66] : memref<1x32xf32, #tpu.memory_space<vmem>>, vector<1x32xf32>
    %c0_67 = arith.constant 0 : index
    %c0_68 = arith.constant 0 : index
    %163 = vector.load %arg10[%c0_67, %c0_68] : memref<1x32xf32, #tpu.memory_space<vmem>>, vector<1x32xf32>
    %cst_69 = arith.constant dense<0.000000e+00> : vector<8xf32>
    %164 = vector.multi_reduction <add>, %161, %cst_69 [1] : vector<8x32xf32> to vector<8xf32>
    %165 = vector.shape_cast %164 : vector<8xf32> to vector<8x1xf32>
    %cst_70 = arith.constant 3.200000e+01 : f32
    %166 = vector.broadcast %cst_70 : f32 to vector<8x1xf32>
    %167 = arith.divf %165, %166 : vector<8x1xf32>
    %168 = vector.broadcast %167 : vector<8x1xf32> to vector<8x32xf32>
    %169 = arith.subf %161, %168 : vector<8x32xf32>
    %170 = arith.mulf %169, %169 : vector<8x32xf32>
    %cst_71 = arith.constant dense<0.000000e+00> : vector<8xf32>
    %171 = vector.multi_reduction <add>, %170, %cst_71 [1] : vector<8x32xf32> to vector<8xf32>
    %172 = vector.shape_cast %171 : vector<8xf32> to vector<8x1xf32>
    %cst_72 = arith.constant 3.200000e+01 : f32
    %173 = vector.broadcast %cst_72 : f32 to vector<8x1xf32>
    %174 = arith.divf %172, %173 : vector<8x1xf32>
    %175 = vector.broadcast %167 : vector<8x1xf32> to vector<8x32xf32>
    %176 = arith.subf %161, %175 : vector<8x32xf32>
    %cst_73 = arith.constant 9.99999974E-6 : f32
    %177 = vector.broadcast %cst_73 : f32 to vector<8x1xf32>
    %178 = arith.addf %174, %177 : vector<8x1xf32>
    %179 = math.rsqrt %178 : vector<8x1xf32>
    %180 = vector.broadcast %179 : vector<8x1xf32> to vector<8x32xf32>
    %181 = arith.mulf %176, %180 : vector<8x32xf32>
    %182 = vector.broadcast %162 : vector<1x32xf32> to vector<8x32xf32>
    %183 = arith.mulf %181, %182 : vector<8x32xf32>
    %184 = vector.broadcast %163 : vector<1x32xf32> to vector<8x32xf32>
    %185 = arith.addf %183, %184 : vector<8x32xf32>
    %186 = arith.truncf %185 : vector<8x32xf32> to vector<8x32xbf16>
    %c0_74 = arith.constant 0 : index
    %c0_75 = arith.constant 0 : index
    %187 = vector.load %arg11[%c0_74, %c0_75] : memref<32x128xbf16, #tpu.memory_space<vmem>>, vector<32x128xbf16>
    %cst_76 = arith.constant dense<0.000000e+00> : vector<8x128xf32>
    %188 = tpu.matmul %186, %187, %cst_76 {dimension_numbers = #tpu.dot_dimension_numbers<[1], [0], [0], [1], [0, 0, 1, 1], [], []>} : vector<8x32xbf16>, vector<32x128xbf16>, vector<8x128xf32> -> vector<8x128xf32>
    %c0_77 = arith.constant 0 : index
    %c0_78 = arith.constant 0 : index
    %189 = vector.load %arg12[%c0_77, %c0_78] : memref<1x128xf32, #tpu.memory_space<vmem>>, vector<1x128xf32>
    %190 = vector.broadcast %189 : vector<1x128xf32> to vector<8x128xf32>
    %191 = arith.addf %188, %190 : vector<8x128xf32>
    %cst_79 = arith.constant 1.702000e+00 : f32
    %192 = vector.broadcast %cst_79 : f32 to vector<8x128xf32>
    %193 = arith.mulf %192, %191 : vector<8x128xf32>
    %194 = arith.negf %193 : vector<8x128xf32>
    %195 = math.exp %194 : vector<8x128xf32>
    %cst_80 = arith.constant 1.000000e+00 : f32
    %196 = vector.broadcast %cst_80 : f32 to vector<8x128xf32>
    %197 = arith.addf %196, %195 : vector<8x128xf32>
    %198 = arith.divf %196, %197 : vector<8x128xf32>
    %199 = arith.mulf %191, %198 : vector<8x128xf32>
    %200 = arith.truncf %199 : vector<8x128xf32> to vector<8x128xbf16>
    %c0_81 = arith.constant 0 : index
    %c0_82 = arith.constant 0 : index
    %201 = vector.load %arg13[%c0_81, %c0_82] : memref<128x32xbf16, #tpu.memory_space<vmem>>, vector<128x32xbf16>
    %cst_83 = arith.constant dense<0.000000e+00> : vector<8x32xf32>
    %202 = tpu.matmul %200, %201, %cst_83 {dimension_numbers = #tpu.dot_dimension_numbers<[1], [0], [0], [1], [0, 0, 1, 1], [], []>} : vector<8x128xbf16>, vector<128x32xbf16>, vector<8x32xf32> -> vector<8x32xf32>
    %c0_84 = arith.constant 0 : index
    %c0_85 = arith.constant 0 : index
    %203 = vector.load %arg14[%c0_84, %c0_85] : memref<1x32xf32, #tpu.memory_space<vmem>>, vector<1x32xf32>
    %204 = vector.broadcast %203 : vector<1x32xf32> to vector<8x32xf32>
    %205 = arith.addf %202, %204 : vector<8x32xf32>
    %206 = arith.addf %161, %205 : vector<8x32xf32>
    %207 = vector.shape_cast %206 : vector<8x32xf32> to vector<1x8x32xf32>
    %c0_86 = arith.constant 0 : index
    %c0_87 = arith.constant 0 : index
    %c0_88 = arith.constant 0 : index
    %208 = vector.load %arg15[%c0_86, %c0_87, %c0_88] : memref<1x8x32xf32, #tpu.memory_space<vmem>>, vector<1x8x32xf32>
    tpu.vector_store %arg15[%c0_86, %c0_87, %c0_88], %207 {strides = array<i32>} : memref<1x8x32xf32, #tpu.memory_space<vmem>>, vector<1x8x32xf32>,
    return
  }
  func.func @transform_0(%arg0: i32) -> (i32, i32, i32) {
    %c0_i32 = arith.constant 0 : i32
    %c0_i32_0 = arith.constant 0 : i32
    %c0_i32_1 = arith.constant 0 : i32
    return %arg0, %c0_i32, %c0_i32_0 : i32, i32, i32
  }
  func.func @transform_1(%arg0: i32) -> (i32, i32) {
    %c0_i32 = arith.constant 0 : i32
    %c0_i32_0 = arith.constant 0 : i32
    %c0_i32_1 = arith.constant 0 : i32
    return %c0_i32, %c0_i32_0 : i32, i32
  }
  func.func @transform_2(%arg0: i32) -> (i32, i32) {
    %c0_i32 = arith.constant 0 : i32
    %c0_i32_0 = arith.constant 0 : i32
    %c0_i32_1 = arith.constant 0 : i32
    return %c0_i32, %c0_i32_0 : i32, i32
  }
  func.func @transform_3(%arg0: i32) -> (i32, i32) {
    %c0_i32 = arith.constant 0 : i32
    %c0_i32_0 = arith.constant 0 : i32
    %c0_i32_1 = arith.constant 0 : i32
    return %c0_i32, %c0_i32_0 : i32, i32
  }
  func.func @transform_4(%arg0: i32) -> (i32, i32) {
    %c0_i32 = arith.constant 0 : i32
    %c0_i32_0 = arith.constant 0 : i32
    %c0_i32_1 = arith.constant 0 : i32
    return %c0_i32, %c0_i32_0 : i32, i32
  }
  func.func @transform_5(%arg0: i32) -> (i32, i32) {
    %c0_i32 = arith.constant 0 : i32
    %c0_i32_0 = arith.constant 0 : i32
    %c0_i32_1 = arith.constant 0 : i32
    return %c0_i32, %c0_i32_0 : i32, i32
  }
  func.func @transform_6(%arg0: i32) -> (i32, i32) {
    %c0_i32 = arith.constant 0 : i32
    %c0_i32_0 = arith.constant 0 : i32
    %c0_i32_1 = arith.constant 0 : i32
    return %c0_i32, %c0_i32_0 : i32, i32
  }
  func.func @transform_7(%arg0: i32) -> (i32, i32) {
    %c0_i32 = arith.constant 0 : i32
    %c0_i32_0 = arith.constant 0 : i32
    %c0_i32_1 = arith.constant 0 : i32
    return %c0_i32, %c0_i32_0 : i32, i32
  }
  func.func @transform_8(%arg0: i32) -> (i32, i32) {
    %c0_i32 = arith.constant 0 : i32
    %c0_i32_0 = arith.constant 0 : i32
    %c0_i32_1 = arith.constant 0 : i32
    return %c0_i32, %c0_i32_0 : i32, i32
  }
  func.func @transform_9(%arg0: i32) -> (i32, i32) {
    %c0_i32 = arith.constant 0 : i32
    %c0_i32_0 = arith.constant 0 : i32
    %c0_i32_1 = arith.constant 0 : i32
    return %c0_i32, %c0_i32_0 : i32, i32
  }
  func.func @transform_10(%arg0: i32) -> (i32, i32) {
    %c0_i32 = arith.constant 0 : i32
    %c0_i32_0 = arith.constant 0 : i32
    %c0_i32_1 = arith.constant 0 : i32
    return %c0_i32, %c0_i32_0 : i32, i32
  }
  func.func @transform_11(%arg0: i32) -> (i32, i32) {
    %c0_i32 = arith.constant 0 : i32
    %c0_i32_0 = arith.constant 0 : i32
    %c0_i32_1 = arith.constant 0 : i32
    return %c0_i32, %c0_i32_0 : i32, i32
  }
  func.func @transform_12(%arg0: i32) -> (i32, i32) {
    %c0_i32 = arith.constant 0 : i32
    %c0_i32_0 = arith.constant 0 : i32
    %c0_i32_1 = arith.constant 0 : i32
    return %c0_i32, %c0_i32_0 : i32, i32
  }
  func.func @transform_13(%arg0: i32) -> (i32, i32) {
    %c0_i32 = arith.constant 0 : i32
    %c0_i32_0 = arith.constant 0 : i32
    %c0_i32_1 = arith.constant 0 : i32
    return %c0_i32, %c0_i32_0 : i32, i32
  }
  func.func @transform_14(%arg0: i32) -> (i32, i32, i32) {
    %c0_i32 = arith.constant 0 : i32
    %c0_i32_0 = arith.constant 0 : i32
    %c0_i32_1 = arith.constant 0 : i32
    return %arg0, %c0_i32, %c0_i32_0 : i32, i32, i32
  }
}

module attributes {stable_mosaic.version = 11 : i64} {
  func.func @kernel(%arg0: i32, %arg1: memref<1x8x32xf32, #tpu.memory_space<vmem>>, %arg2: memref<1x32xf32, #tpu.memory_space<vmem>>, %arg3: memref<1x32xf32, #tpu.memory_space<vmem>>, %arg4: memref<32x96xbf16, #tpu.memory_space<vmem>>, %arg5: memref<1x32xf32, #tpu.memory_space<vmem>>, %arg6: memref<1x32xf32, #tpu.memory_space<vmem>>, %arg7: memref<32x32xbf16, #tpu.memory_space<vmem>>, %arg8: memref<1x32xf32, #tpu.memory_space<vmem>>, %arg9: memref<1x32xf32, #tpu.memory_space<vmem>>, %arg10: memref<1x32xf32, #tpu.memory_space<vmem>>, %arg11: memref<32x128xbf16, #tpu.memory_space<vmem>>, %arg12: memref<1x128xf32, #tpu.memory_space<vmem>>, %arg13: memref<128x32xbf16, #tpu.memory_space<vmem>>, %arg14: memref<1x32xf32, #tpu.memory_space<vmem>>, %arg15: memref<1x8x32xf32, #tpu.memory_space<vmem>>, %arg16: memref<8x8xf32, #tpu.memory_space<vmem>>, %arg17: memref<8x32xbf16, #tpu.memory_space<vmem>>) attributes {dimension_semantics = [#tpu.dimension_semantics<parallel>], iteration_bounds = array<i64: 2>, scalar_prefetch = 0 : i64, scratch_operands = 2 : i64, tpu.core_type = #tpu.core_type<tc>, window_params = [{transform_indices = @transform_0, window_bounds = array<i64: 1, 8, 32>}, {pipeline_mode = #tpu.pipeline_mode<synchronous>, transform_indices = @transform_1, window_bounds = array<i64: 1, 32>}, {pipeline_mode = #tpu.pipeline_mode<synchronous>, transform_indices = @transform_2, window_bounds = array<i64: 1, 32>}, {pipeline_mode = #tpu.pipeline_mode<synchronous>, transform_indices = @transform_3, window_bounds = array<i64: 32, 96>}, {pipeline_mode = #tpu.pipeline_mode<synchronous>, transform_indices = @transform_4, window_bounds = array<i64: 1, 32>}, {pipeline_mode = #tpu.pipeline_mode<synchronous>, transform_indices = @transform_5, window_bounds = array<i64: 1, 32>}, {pipeline_mode = #tpu.pipeline_mode<synchronous>, transform_indices = @transform_6, window_bounds = array<i64: 32, 32>}, {pipeline_mode = #tpu.pipeline_mode<synchronous>, transform_indices = @transform_7, window_bounds = array<i64: 1, 32>}, {pipeline_mode = #tpu.pipeline_mode<synchronous>, transform_indices = @transform_8, window_bounds = array<i64: 1, 32>}, {pipeline_mode = #tpu.pipeline_mode<synchronous>, transform_indices = @transform_9, window_bounds = array<i64: 1, 32>}, {pipeline_mode = #tpu.pipeline_mode<synchronous>, transform_indices = @transform_10, window_bounds = array<i64: 32, 128>}, {pipeline_mode = #tpu.pipeline_mode<synchronous>, transform_indices = @transform_11, window_bounds = array<i64: 1, 128>}, {pipeline_mode = #tpu.pipeline_mode<synchronous>, transform_indices = @transform_12, window_bounds = array<i64: 128, 32>}, {pipeline_mode = #tpu.pipeline_mode<synchronous>, transform_indices = @transform_13, window_bounds = array<i64: 1, 32>}, {transform_indices = @transform_14, window_bounds = array<i64: 1, 8, 32>}]} {
    %c0 = arith.constant 0 : index
    %c0_0 = arith.constant 0 : index
    %c0_1 = arith.constant 0 : index
    %0 = vector.load %arg1[%c0, %c0_0, %c0_1] : memref<1x8x32xf32, #tpu.memory_space<vmem>>, vector<1x8x32xf32>
    %1 = vector.shape_cast %0 : vector<1x8x32xf32> to vector<8x32xf32>
    %c0_2 = arith.constant 0 : index
    %c0_3 = arith.constant 0 : index
    %2 = vector.load %arg2[%c0_2, %c0_3] : memref<1x32xf32, #tpu.memory_space<vmem>>, vector<1x32xf32>
    %c0_4 = arith.constant 0 : index
    %c0_5 = arith.constant 0 : index
    %3 = vector.load %arg3[%c0_4, %c0_5] : memref<1x32xf32, #tpu.memory_space<vmem>>, vector<1x32xf32>
    %cst = arith.constant dense<0.000000e+00> : vector<8xf32>
    %4 = vector.multi_reduction <add>, %1, %cst [1] : vector<8x32xf32> to vector<8xf32>
    %5 = vector.shape_cast %4 : vector<8xf32> to vector<8x1xf32>
    %cst_6 = arith.constant 3.200000e+01 : f32
    %6 = vector.broadcast %cst_6 : f32 to vector<8x1xf32>
    %7 = arith.divf %5, %6 : vector<8x1xf32>
    %8 = vector.broadcast %7 : vector<8x1xf32> to vector<8x32xf32>
    %9 = arith.subf %1, %8 : vector<8x32xf32>
    %10 = arith.mulf %9, %9 : vector<8x32xf32>
    %cst_7 = arith.constant dense<0.000000e+00> : vector<8xf32>
    %11 = vector.multi_reduction <add>, %10, %cst_7 [1] : vector<8x32xf32> to vector<8xf32>
    %12 = vector.shape_cast %11 : vector<8xf32> to vector<8x1xf32>
    %cst_8 = arith.constant 3.200000e+01 : f32
    %13 = vector.broadcast %cst_8 : f32 to vector<8x1xf32>
    %14 = arith.divf %12, %13 : vector<8x1xf32>
    %15 = vector.broadcast %7 : vector<8x1xf32> to vector<8x32xf32>
    %16 = arith.subf %1, %15 : vector<8x32xf32>
    %cst_9 = arith.constant 9.99999974E-6 : f32
    %17 = vector.broadcast %cst_9 : f32 to vector<8x1xf32>
    %18 = arith.addf %14, %17 : vector<8x1xf32>
    %19 = math.rsqrt %18 : vector<8x1xf32>
    %20 = vector.broadcast %19 : vector<8x1xf32> to vector<8x32xf32>
    %21 = arith.mulf %16, %20 : vector<8x32xf32>
    %22 = vector.broadcast %2 : vector<1x32xf32> to vector<8x32xf32>
    %23 = arith.mulf %21, %22 : vector<8x32xf32>
    %24 = vector.broadcast %3 : vector<1x32xf32> to vector<8x32xf32>
    %25 = arith.addf %23, %24 : vector<8x32xf32>
    %26 = arith.truncf %25 : vector<8x32xf32> to vector<8x32xbf16>
    %c0_10 = arith.constant 0 : index
    %c0_11 = arith.constant 0 : index
    %27 = vector.load %arg4[%c0_10, %c0_11] : memref<32x96xbf16, #tpu.memory_space<vmem>>, vector<32x96xbf16>
    %cst_12 = arith.constant dense<0.000000e+00> : vector<8x96xf32>
    %28 = tpu.matmul %26, %27, %cst_12 {dimension_numbers = #tpu.dot_dimension_numbers<[1], [0], [0], [1], [0, 0, 1, 1], [], []>} : vector<8x32xbf16>, vector<32x96xbf16>, vector<8x96xf32> -> vector<8x96xf32>
    %c0_13 = arith.constant 0 : index
    %c0_14 = arith.constant 0 : index
    %29 = vector.load %arg5[%c0_13, %c0_14] : memref<1x32xf32, #tpu.memory_space<vmem>>, vector<1x32xf32>
    %c0_15 = arith.constant 0 : index
    %c0_16 = arith.constant 0 : index
    %30 = vector.load %arg6[%c0_15, %c0_16] : memref<1x32xf32, #tpu.memory_space<vmem>>, vector<1x32xf32>
    %31 = vector.extract_strided_slice %28 {offsets = [0, 0], sizes = [8, 8], strides = [1, 1]} : vector<8x96xf32> to vector<8x8xf32>
    %32 = vector.extract_strided_slice %29 {offsets = [0, 0], sizes = [1, 8], strides = [1, 1]} : vector<1x32xf32> to vector<1x8xf32>
    %33 = vector.broadcast %32 : vector<1x8xf32> to vector<8x8xf32>
    %34 = arith.addf %31, %33 : vector<8x8xf32>
    %35 = arith.truncf %34 : vector<8x8xf32> to vector<8x8xbf16>
    %36 = vector.extract_strided_slice %28 {offsets = [0, 32], sizes = [8, 8], strides = [1, 1]} : vector<8x96xf32> to vector<8x8xf32>
    %37 = arith.truncf %36 : vector<8x8xf32> to vector<8x8xbf16>
    %38 = vector.extract_strided_slice %28 {offsets = [0, 64], sizes = [8, 8], strides = [1, 1]} : vector<8x96xf32> to vector<8x8xf32>
    %39 = vector.extract_strided_slice %30 {offsets = [0, 0], sizes = [1, 8], strides = [1, 1]} : vector<1x32xf32> to vector<1x8xf32>
    %40 = vector.broadcast %39 : vector<1x8xf32> to vector<8x8xf32>
    %41 = arith.addf %38, %40 : vector<8x8xf32>
    %42 = arith.truncf %41 : vector<8x8xf32> to vector<8x8xbf16>
    "tpu.trace_start"() <{level = 10 : i32, message = "qd,kd->qk"}> : () -> ()
    %cst_17 = arith.constant dense<0.000000e+00> : vector<8x8xf32>
    %43 = tpu.matmul %35, %37, %cst_17 {dimension_numbers = #tpu.dot_dimension_numbers<[1], [1], [0], [0], [0, 0, 1, 0], [], []>} : vector<8x8xbf16>, vector<8x8xbf16>, vector<8x8xf32> -> vector<8x8xf32>
    "tpu.trace_stop"() : () -> ()
    %cst_18 = arith.constant 0.353553385 : f32
    %44 = vector.broadcast %cst_18 : f32 to vector<8x8xf32>
    %45 = arith.mulf %43, %44 : vector<8x8xf32>
    %cst_19 = arith.constant dense<0xFF800000> : vector<8xf32>
    %46 = vector.multi_reduction <maximumf>, %45, %cst_19 [1] : vector<8x8xf32> to vector<8xf32>
    %47 = vector.shape_cast %46 : vector<8xf32> to vector<8x1xf32>
    %48 = vector.broadcast %47 : vector<8x1xf32> to vector<8x8xf32>
    %49 = arith.subf %45, %48 : vector<8x8xf32>
    %c0_20 = arith.constant 0 : index
    %c0_21 = arith.constant 0 : index
    %50 = vector.load %arg16[%c0_20, %c0_21] : memref<8x8xf32, #tpu.memory_space<vmem>>, vector<8x8xf32>
    tpu.vector_store %arg16[%c0_20, %c0_21], %49 {strides = array<i32>} : memref<8x8xf32, #tpu.memory_space<vmem>>, vector<8x8xf32>,
    %c0_22 = arith.constant 0 : index
    %c0_23 = arith.constant 0 : index
    %51 = vector.load %arg16[%c0_22, %c0_23] : memref<8x8xf32, #tpu.memory_space<vmem>>, vector<8x8xf32>
    %52 = math.exp %51 : vector<8x8xf32>
    %cst_24 = arith.constant dense<0.000000e+00> : vector<8xf32>
    %53 = vector.multi_reduction <add>, %52, %cst_24 [1] : vector<8x8xf32> to vector<8xf32>
    %54 = vector.shape_cast %53 : vector<8xf32> to vector<8x1xf32>
    %55 = tpu.reciprocal %54 {approx = true} : vector<8x1xf32> -> vector<8x1xf32>
    %56 = vector.broadcast %55 : vector<8x1xf32> to vector<8x8xf32>
    %57 = arith.mulf %52, %56 : vector<8x8xf32>
    %58 = arith.truncf %57 : vector<8x8xf32> to vector<8x8xbf16>
    %cst_25 = arith.constant dense<0.000000e+00> : vector<8x8xf32>
    %59 = tpu.matmul %58, %42, %cst_25 {dimension_numbers = #tpu.dot_dimension_numbers<[1], [0], [0], [1], [0, 0, 1, 1], [], []>} : vector<8x8xbf16>, vector<8x8xbf16>, vector<8x8xf32> -> vector<8x8xf32>
    %60 = arith.truncf %59 : vector<8x8xf32> to vector<8x8xbf16>
    %c0_26 = arith.constant 0 : index
    %c0_27 = arith.constant 0 : index
    %61 = vector.load %arg17[%c0_26, %c0_27] : memref<8x32xbf16, #tpu.memory_space<vmem>>, vector<8x8xbf16>
    tpu.vector_store %arg17[%c0_26, %c0_27], %60 {strides = array<i32>} : memref<8x32xbf16, #tpu.memory_space<vmem>>, vector<8x8xbf16>,
    %62 = vector.extract_strided_slice %28 {offsets = [0, 8], sizes = [8, 8], strides = [1, 1]} : vector<8x96xf32> to vector<8x8xf32>
    %63 = vector.extract_strided_slice %29 {offsets = [0, 8], sizes = [1, 8], strides = [1, 1]} : vector<1x32xf32> to vector<1x8xf32>
    %64 = vector.broadcast %63 : vector<1x8xf32> to vector<8x8xf32>
    %65 = arith.addf %62, %64 : vector<8x8xf32>
    %66 = arith.truncf %65 : vector<8x8xf32> to vector<8x8xbf16>
    %67 = vector.extract_strided_slice %28 {offsets = [0, 40], sizes = [8, 8], strides = [1, 1]} : vector<8x96xf32> to vector<8x8xf32>
    %68 = arith.truncf %67 : vector<8x8xf32> to vector<8x8xbf16>
    %69 = vector.extract_strided_slice %28 {offsets = [0, 72], sizes = [8, 8], strides = [1, 1]} : vector<8x96xf32> to vector<8x8xf32>
    %70 = vector.extract_strided_slice %30 {offsets = [0, 8], sizes = [1, 8], strides = [1, 1]} : vector<1x32xf32> to vector<1x8xf32>
    %71 = vector.broadcast %70 : vector<1x8xf32> to vector<8x8xf32>
    %72 = arith.addf %69, %71 : vector<8x8xf32>
    %73 = arith.truncf %72 : vector<8x8xf32> to vector<8x8xbf16>
    "tpu.trace_start"() <{level = 10 : i32, message = "qd,kd->qk"}> : () -> ()
    %cst_28 = arith.constant dense<0.000000e+00> : vector<8x8xf32>
    %74 = tpu.matmul %66, %68, %cst_28 {dimension_numbers = #tpu.dot_dimension_numbers<[1], [1], [0], [0], [0, 0, 1, 0], [], []>} : vector<8x8xbf16>, vector<8x8xbf16>, vector<8x8xf32> -> vector<8x8xf32>
    "tpu.trace_stop"() : () -> ()
    %cst_29 = arith.constant 0.353553385 : f32
    %75 = vector.broadcast %cst_29 : f32 to vector<8x8xf32>
    %76 = arith.mulf %74, %75 : vector<8x8xf32>
    %cst_30 = arith.constant dense<0xFF800000> : vector<8xf32>
    %77 = vector.multi_reduction <maximumf>, %76, %cst_30 [1] : vector<8x8xf32> to vector<8xf32>
    %78 = vector.shape_cast %77 : vector<8xf32> to vector<8x1xf32>
    %79 = vector.broadcast %78 : vector<8x1xf32> to vector<8x8xf32>
    %80 = arith.subf %76, %79 : vector<8x8xf32>
    %c0_31 = arith.constant 0 : index
    %c0_32 = arith.constant 0 : index
    %81 = vector.load %arg16[%c0_31, %c0_32] : memref<8x8xf32, #tpu.memory_space<vmem>>, vector<8x8xf32>
    tpu.vector_store %arg16[%c0_31, %c0_32], %80 {strides = array<i32>} : memref<8x8xf32, #tpu.memory_space<vmem>>, vector<8x8xf32>,
    %c0_33 = arith.constant 0 : index
    %c0_34 = arith.constant 0 : index
    %82 = vector.load %arg16[%c0_33, %c0_34] : memref<8x8xf32, #tpu.memory_space<vmem>>, vector<8x8xf32>
    %83 = math.exp %82 : vector<8x8xf32>
    %cst_35 = arith.constant dense<0.000000e+00> : vector<8xf32>
    %84 = vector.multi_reduction <add>, %83, %cst_35 [1] : vector<8x8xf32> to vector<8xf32>
    %85 = vector.shape_cast %84 : vector<8xf32> to vector<8x1xf32>
    %86 = tpu.reciprocal %85 {approx = true} : vector<8x1xf32> -> vector<8x1xf32>
    %87 = vector.broadcast %86 : vector<8x1xf32> to vector<8x8xf32>
    %88 = arith.mulf %83, %87 : vector<8x8xf32>
    %89 = arith.truncf %88 : vector<8x8xf32> to vector<8x8xbf16>
    %cst_36 = arith.constant dense<0.000000e+00> : vector<8x8xf32>
    %90 = tpu.matmul %89, %73, %cst_36 {dimension_numbers = #tpu.dot_dimension_numbers<[1], [0], [0], [1], [0, 0, 1, 1], [], []>} : vector<8x8xbf16>, vector<8x8xbf16>, vector<8x8xf32> -> vector<8x8xf32>
    %91 = arith.truncf %90 : vector<8x8xf32> to vector<8x8xbf16>
    %c0_37 = arith.constant 0 : index
    %c8 = arith.constant 8 : index
    %92 = vector.load %arg17[%c0_37, %c8] : memref<8x32xbf16, #tpu.memory_space<vmem>>, vector<8x8xbf16>
    tpu.vector_store %arg17[%c0_37, %c8], %91 {strides = array<i32>} : memref<8x32xbf16, #tpu.memory_space<vmem>>, vector<8x8xbf16>,
    %93 = vector.extract_strided_slice %28 {offsets = [0, 16], sizes = [8, 8], strides = [1, 1]} : vector<8x96xf32> to vector<8x8xf32>
    %94 = vector.extract_strided_slice %29 {offsets = [0, 16], sizes = [1, 8], strides = [1, 1]} : vector<1x32xf32> to vector<1x8xf32>
    %95 = vector.broadcast %94 : vector<1x8xf32> to vector<8x8xf32>
    %96 = arith.addf %93, %95 : vector<8x8xf32>
    %97 = arith.truncf %96 : vector<8x8xf32> to vector<8x8xbf16>
    %98 = vector.extract_strided_slice %28 {offsets = [0, 48], sizes = [8, 8], strides = [1, 1]} : vector<8x96xf32> to vector<8x8xf32>
    %99 = arith.truncf %98 : vector<8x8xf32> to vector<8x8xbf16>
    %100 = vector.extract_strided_slice %28 {offsets = [0, 80], sizes = [8, 8], strides = [1, 1]} : vector<8x96xf32> to vector<8x8xf32>
    %101 = vector.extract_strided_slice %30 {offsets = [0, 16], sizes = [1, 8], strides = [1, 1]} : vector<1x32xf32> to vector<1x8xf32>
    %102 = vector.broadcast %101 : vector<1x8xf32> to vector<8x8xf32>
    %103 = arith.addf %100, %102 : vector<8x8xf32>
    %104 = arith.truncf %103 : vector<8x8xf32> to vector<8x8xbf16>
    "tpu.trace_start"() <{level = 10 : i32, message = "qd,kd->qk"}> : () -> ()
    %cst_38 = arith.constant dense<0.000000e+00> : vector<8x8xf32>
    %105 = tpu.matmul %97, %99, %cst_38 {dimension_numbers = #tpu.dot_dimension_numbers<[1], [1], [0], [0], [0, 0, 1, 0], [], []>} : vector<8x8xbf16>, vector<8x8xbf16>, vector<8x8xf32> -> vector<8x8xf32>
    "tpu.trace_stop"() : () -> ()
    %cst_39 = arith.constant 0.353553385 : f32
    %106 = vector.broadcast %cst_39 : f32 to vector<8x8xf32>
    %107 = arith.mulf %105, %106 : vector<8x8xf32>
    %cst_40 = arith.constant dense<0xFF800000> : vector<8xf32>
    %108 = vector.multi_reduction <maximumf>, %107, %cst_40 [1] : vector<8x8xf32> to vector<8xf32>
    %109 = vector.shape_cast %108 : vector<8xf32> to vector<8x1xf32>
    %110 = vector.broadcast %109 : vector<8x1xf32> to vector<8x8xf32>
    %111 = arith.subf %107, %110 : vector<8x8xf32>
    %c0_41 = arith.constant 0 : index
    %c0_42 = arith.constant 0 : index
    %112 = vector.load %arg16[%c0_41, %c0_42] : memref<8x8xf32, #tpu.memory_space<vmem>>, vector<8x8xf32>
    tpu.vector_store %arg16[%c0_41, %c0_42], %111 {strides = array<i32>} : memref<8x8xf32, #tpu.memory_space<vmem>>, vector<8x8xf32>,
    %c0_43 = arith.constant 0 : index
    %c0_44 = arith.constant 0 : index
    %113 = vector.load %arg16[%c0_43, %c0_44] : memref<8x8xf32, #tpu.memory_space<vmem>>, vector<8x8xf32>
    %114 = math.exp %113 : vector<8x8xf32>
    %cst_45 = arith.constant dense<0.000000e+00> : vector<8xf32>
    %115 = vector.multi_reduction <add>, %114, %cst_45 [1] : vector<8x8xf32> to vector<8xf32>
    %116 = vector.shape_cast %115 : vector<8xf32> to vector<8x1xf32>
    %117 = tpu.reciprocal %116 {approx = true} : vector<8x1xf32> -> vector<8x1xf32>
    %118 = vector.broadcast %117 : vector<8x1xf32> to vector<8x8xf32>
    %119 = arith.mulf %114, %118 : vector<8x8xf32>
    %120 = arith.truncf %119 : vector<8x8xf32> to vector<8x8xbf16>
    %cst_46 = arith.constant dense<0.000000e+00> : vector<8x8xf32>
    %121 = tpu.matmul %120, %104, %cst_46 {dimension_numbers = #tpu.dot_dimension_numbers<[1], [0], [0], [1], [0, 0, 1, 1], [], []>} : vector<8x8xbf16>, vector<8x8xbf16>, vector<8x8xf32> -> vector<8x8xf32>
    %122 = arith.truncf %121 : vector<8x8xf32> to vector<8x8xbf16>
    %c0_47 = arith.constant 0 : index
    %c16 = arith.constant 16 : index
    %123 = vector.load %arg17[%c0_47, %c16] : memref<8x32xbf16, #tpu.memory_space<vmem>>, vector<8x8xbf16>
    tpu.vector_store %arg17[%c0_47, %c16], %122 {strides = array<i32>} : memref<8x32xbf16, #tpu.memory_space<vmem>>, vector<8x8xbf16>,
    %124 = vector.extract_strided_slice %28 {offsets = [0, 24], sizes = [8, 8], strides = [1, 1]} : vector<8x96xf32> to vector<8x8xf32>
    %125 = vector.extract_strided_slice %29 {offsets = [0, 24], sizes = [1, 8], strides = [1, 1]} : vector<1x32xf32> to vector<1x8xf32>
    %126 = vector.broadcast %125 : vector<1x8xf32> to vector<8x8xf32>
    %127 = arith.addf %124, %126 : vector<8x8xf32>
    %128 = arith.truncf %127 : vector<8x8xf32> to vector<8x8xbf16>
    %129 = vector.extract_strided_slice %28 {offsets = [0, 56], sizes = [8, 8], strides = [1, 1]} : vector<8x96xf32> to vector<8x8xf32>
    %130 = arith.truncf %129 : vector<8x8xf32> to vector<8x8xbf16>
    %131 = vector.extract_strided_slice %28 {offsets = [0, 88], sizes = [8, 8], strides = [1, 1]} : vector<8x96xf32> to vector<8x8xf32>
    %132 = vector.extract_strided_slice %30 {offsets = [0, 24], sizes = [1, 8], strides = [1, 1]} : vector<1x32xf32> to vector<1x8xf32>
    %133 = vector.broadcast %132 : vector<1x8xf32> to vector<8x8xf32>
    %134 = arith.addf %131, %133 : vector<8x8xf32>
    %135 = arith.truncf %134 : vector<8x8xf32> to vector<8x8xbf16>
    "tpu.trace_start"() <{level = 10 : i32, message = "qd,kd->qk"}> : () -> ()
    %cst_48 = arith.constant dense<0.000000e+00> : vector<8x8xf32>
    %136 = tpu.matmul %128, %130, %cst_48 {dimension_numbers = #tpu.dot_dimension_numbers<[1], [1], [0], [0], [0, 0, 1, 0], [], []>} : vector<8x8xbf16>, vector<8x8xbf16>, vector<8x8xf32> -> vector<8x8xf32>
    "tpu.trace_stop"() : () -> ()
    %cst_49 = arith.constant 0.353553385 : f32
    %137 = vector.broadcast %cst_49 : f32 to vector<8x8xf32>
    %138 = arith.mulf %136, %137 : vector<8x8xf32>
    %cst_50 = arith.constant dense<0xFF800000> : vector<8xf32>
    %139 = vector.multi_reduction <maximumf>, %138, %cst_50 [1] : vector<8x8xf32> to vector<8xf32>
    %140 = vector.shape_cast %139 : vector<8xf32> to vector<8x1xf32>
    %141 = vector.broadcast %140 : vector<8x1xf32> to vector<8x8xf32>
    %142 = arith.subf %138, %141 : vector<8x8xf32>
    %c0_51 = arith.constant 0 : index
    %c0_52 = arith.constant 0 : index
    %143 = vector.load %arg16[%c0_51, %c0_52] : memref<8x8xf32, #tpu.memory_space<vmem>>, vector<8x8xf32>
    tpu.vector_store %arg16[%c0_51, %c0_52], %142 {strides = array<i32>} : memref<8x8xf32, #tpu.memory_space<vmem>>, vector<8x8xf32>,
    %c0_53 = arith.constant 0 : index
    %c0_54 = arith.constant 0 : index
    %144 = vector.load %arg16[%c0_53, %c0_54] : memref<8x8xf32, #tpu.memory_space<vmem>>, vector<8x8xf32>
    %145 = math.exp %144 : vector<8x8xf32>
    %cst_55 = arith.constant dense<0.000000e+00> : vector<8xf32>
    %146 = vector.multi_reduction <add>, %145, %cst_55 [1] : vector<8x8xf32> to vector<8xf32>
    %147 = vector.shape_cast %146 : vector<8xf32> to vector<8x1xf32>
    %148 = tpu.reciprocal %147 {approx = true} : vector<8x1xf32> -> vector<8x1xf32>
    %149 = vector.broadcast %148 : vector<8x1xf32> to vector<8x8xf32>
    %150 = arith.mulf %145, %149 : vector<8x8xf32>
    %151 = arith.truncf %150 : vector<8x8xf32> to vector<8x8xbf16>
    %cst_56 = arith.constant dense<0.000000e+00> : vector<8x8xf32>
    %152 = tpu.matmul %151, %135, %cst_56 {dimension_numbers = #tpu.dot_dimension_numbers<[1], [0], [0], [1], [0, 0, 1, 1], [], []>} : vector<8x8xbf16>, vector<8x8xbf16>, vector<8x8xf32> -> vector<8x8xf32>
    %153 = arith.truncf %152 : vector<8x8xf32> to vector<8x8xbf16>
    %c0_57 = arith.constant 0 : index
    %c24 = arith.constant 24 : index
    %154 = vector.load %arg17[%c0_57, %c24] : memref<8x32xbf16, #tpu.memory_space<vmem>>, vector<8x8xbf16>
    tpu.vector_store %arg17[%c0_57, %c24], %153 {strides = array<i32>} : memref<8x32xbf16, #tpu.memory_space<vmem>>, vector<8x8xbf16>,
    %c0_58 = arith.constant 0 : index
    %c0_59 = arith.constant 0 : index
    %155 = vector.load %arg17[%c0_58, %c0_59] : memref<8x32xbf16, #tpu.memory_space<vmem>>, vector<8x32xbf16>
    %c0_60 = arith.constant 0 : index
    %c0_61 = arith.constant 0 : index
    %156 = vector.load %arg7[%c0_60, %c0_61] : memref<32x32xbf16, #tpu.memory_space<vmem>>, vector<32x32xbf16>
    %cst_62 = arith.constant dense<0.000000e+00> : vector<8x32xf32>
    %157 = tpu.matmul %155, %156, %cst_62 {dimension_numbers = #tpu.dot_dimension_numbers<[1], [0], [0], [1], [0, 0, 1, 1], [], []>} : vector<8x32xbf16>, vector<32x32xbf16>, vector<8x32xf32> -> vector<8x32xf32>
    %c0_63 = arith.constant 0 : index
    %c0_64 = arith.constant 0 : index
    %158 = vector.load %arg8[%c0_63, %c0_64] : memref<1x32xf32, #tpu.memory_space<vmem>>, vector<1x32xf32>
    %159 = vector.broadcast %158 : vector<1x32xf32> to vector<8x32xf32>
    %160 = arith.addf %157, %159 : vector<8x32xf32>
    %161 = arith.addf %1, %160 : vector<8x32xf32>
    %c0_65 = arith.constant 0 : index
    %c0_66 = arith.constant 0 : index
    %162 = vector.load %arg9[%c0_65, %c0_66] : memref<1x32xf32, #tpu.memory_space<vmem>>, vector<1x32xf32>
    %c0_67 = arith.constant 0 : index
    %c0_68 = arith.constant 0 : index
    %163 = vector.load %arg10[%c0_67, %c0_68] : memref<1x32xf32, #tpu.memory_space<vmem>>, vector<1x32xf32>
    %cst_69 = arith.constant dense<0.000000e+00> : vector<8xf32>
    %164 = vector.multi_reduction <add>, %161, %cst_69 [1] : vector<8x32xf32> to vector<8xf32>
    %165 = vector.shape_cast %164 : vector<8xf32> to vector<8x1xf32>
    %cst_70 = arith.constant 3.200000e+01 : f32
    %166 = vector.broadcast %cst_70 : f32 to vector<8x1xf32>
    %167 = arith.divf %165, %166 : vector<8x1xf32>
    %168 = vector.broadcast %167 : vector<8x1xf32> to vector<8x32xf32>
    %169 = arith.subf %161, %168 : vector<8x32xf32>
    %170 = arith.mulf %169, %169 : vector<8x32xf32>
    %cst_71 = arith.constant dense<0.000000e+00> : vector<8xf32>
    %171 = vector.multi_reduction <add>, %170, %cst_71 [1] : vector<8x32xf32> to vector<8xf32>
    %172 = vector.shape_cast %171 : vector<8xf32> to vector<8x1xf32>
    %cst_72 = arith.constant 3.200000e+01 : f32
    %173 = vector.broadcast %cst_72 : f32 to vector<8x1xf32>
    %174 = arith.divf %172, %173 : vector<8x1xf32>
    %175 = vector.broadcast %167 : vector<8x1xf32> to vector<8x32xf32>
    %176 = arith.subf %161, %175 : vector<8x32xf32>
    %cst_73 = arith.constant 9.99999974E-6 : f32
    %177 = vector.broadcast %cst_73 : f32 to vector<8x1xf32>
    %178 = arith.addf %174, %177 : vector<8x1xf32>
    %179 = math.rsqrt %178 : vector<8x1xf32>
    %180 = vector.broadcast %179 : vector<8x1xf32> to vector<8x32xf32>
    %181 = arith.mulf %176, %180 : vector<8x32xf32>
    %182 = vector.broadcast %162 : vector<1x32xf32> to vector<8x32xf32>
    %183 = arith.mulf %181, %182 : vector<8x32xf32>
    %184 = vector.broadcast %163 : vector<1x32xf32> to vector<8x32xf32>
    %185 = arith.addf %183, %184 : vector<8x32xf32>
    %186 = arith.truncf %185 : vector<8x32xf32> to vector<8x32xbf16>
    %c0_74 = arith.constant 0 : index
    %c0_75 = arith.constant 0 : index
    %187 = vector.load %arg11[%c0_74, %c0_75] : memref<32x128xbf16, #tpu.memory_space<vmem>>, vector<32x128xbf16>
    %cst_76 = arith.constant dense<0.000000e+00> : vector<8x128xf32>
    %188 = tpu.matmul %186, %187, %cst_76 {dimension_numbers = #tpu.dot_dimension_numbers<[1], [0], [0], [1], [0, 0, 1, 1], [], []>} : vector<8x32xbf16>, vector<32x128xbf16>, vector<8x128xf32> -> vector<8x128xf32>
    %c0_77 = arith.constant 0 : index
    %c0_78 = arith.constant 0 : index
    %189 = vector.load %arg12[%c0_77, %c0_78] : memref<1x128xf32, #tpu.memory_space<vmem>>, vector<1x128xf32>
    %190 = vector.broadcast %189 : vector<1x128xf32> to vector<8x128xf32>
    %191 = arith.addf %188, %190 : vector<8x128xf32>
    %cst_79 = arith.constant 1.702000e+00 : f32
    %192 = vector.broadcast %cst_79 : f32 to vector<8x128xf32>
    %193 = arith.mulf %192, %191 : vector<8x128xf32>
    %194 = arith.negf %193 : vector<8x128xf32>
    %195 = math.exp %194 : vector<8x128xf32>
    %cst_80 = arith.constant 1.000000e+00 : f32
    %196 = vector.broadcast %cst_80 : f32 to vector<8x128xf32>
    %197 = arith.addf %196, %195 : vector<8x128xf32>
    %198 = arith.divf %196, %197 : vector<8x128xf32>
    %199 = arith.mulf %191, %198 : vector<8x128xf32>
    %200 = arith.truncf %199 : vector<8x128xf32> to vector<8x128xbf16>
    %c0_81 = arith.constant 0 : index
    %c0_82 = arith.constant 0 : index
    %201 = vector.load %arg13[%c0_81, %c0_82] : memref<128x32xbf16, #tpu.memory_space<vmem>>, vector<128x32xbf16>
    %cst_83 = arith.constant dense<0.000000e+00> : vector<8x32xf32>
    %202 = tpu.matmul %200, %201, %cst_83 {dimension_numbers = #tpu.dot_dimension_numbers<[1], [0], [0], [1], [0, 0, 1, 1], [], []>} : vector<8x128xbf16>, vector<128x32xbf16>, vector<8x32xf32> -> vector<8x32xf32>
    %c0_84 = arith.constant 0 : index
    %c0_85 = arith.constant 0 : index
    %203 = vector.load %arg14[%c0_84, %c0_85] : memref<1x32xf32, #tpu.memory_space<vmem>>, vector<1x32xf32>
    %204 = vector.broadcast %203 : vector<1x32xf32> to vector<8x32xf32>
    %205 = arith.addf %202, %204 : vector<8x32xf32>
    %206 = arith.addf %161, %205 : vector<8x32xf32>
    %207 = vector.shape_cast %206 : vector<8x32xf32> to vector<1x8x32xf32>
    %c0_86 = arith.constant 0 : index
    %c0_87 = arith.constant 0 : index
    %c0_88 = arith.constant 0 : index
    %208 = vector.load %arg15[%c0_86, %c0_87, %c0_88] : memref<1x8x32xf32, #tpu.memory_space<vmem>>, vector<1x8x32xf32>
    tpu.vector_store %arg15[%c0_86, %c0_87, %c0_88], %207 {strides = array<i32>} : memref<1x8x32xf32, #tpu.memory_space<vmem>>, vector<1x8x32xf32>,
    return
  }
  func.func @transform_0(%arg0: i32) -> (i32, i32, i32) {
    %c0_i32 = arith.constant 0 : i32
    %c0_i32_0 = arith.constant 0 : i32
    %c0_i32_1 = arith.constant 0 : i32
    return %arg0, %c0_i32, %c0_i32_0 : i32, i32, i32
  }
  func.func @transform_1(%arg0: i32) -> (i32, i32) {
    %c0_i32 = arith.constant 0 : i32
    %c0_i32_0 = arith.constant 0 : i32
    %c0_i32_1 = arith.constant 0 : i32
    return %c0_i32, %c0_i32_0 : i32, i32
  }
  func.func @transform_2(%arg0: i32) -> (i32, i32) {
    %c0_i32 = arith.constant 0 : i32
    %c0_i32_0 = arith.constant 0 : i32
    %c0_i32_1 = arith.constant 0 : i32
    return %c0_i32, %c0_i32_0 : i32, i32
  }
  func.func @transform_3(%arg0: i32) -> (i32, i32) {
    %c0_i32 = arith.constant 0 : i32
    %c0_i32_0 = arith.constant 0 : i32
    %c0_i32_1 = arith.constant 0 : i32
    return %c0_i32, %c0_i32_0 : i32, i32
  }
  func.func @transform_4(%arg0: i32) -> (i32, i32) {
    %c0_i32 = arith.constant 0 : i32
    %c0_i32_0 = arith.constant 0 : i32
    %c0_i32_1 = arith.constant 0 : i32
    return %c0_i32, %c0_i32_0 : i32, i32
  }
  func.func @transform_5(%arg0: i32) -> (i32, i32) {
    %c0_i32 = arith.constant 0 : i32
    %c0_i32_0 = arith.constant 0 : i32
    %c0_i32_1 = arith.constant 0 : i32
    return %c0_i32, %c0_i32_0 : i32, i32
  }
  func.func @transform_6(%arg0: i32) -> (i32, i32) {
    %c0_i32 = arith.constant 0 : i32
    %c0_i32_0 = arith.constant 0 : i32
    %c0_i32_1 = arith.constant 0 : i32
    return %c0_i32, %c0_i32_0 : i32, i32
  }
  func.func @transform_7(%arg0: i32) -> (i32, i32) {
    %c0_i32 = arith.constant 0 : i32
    %c0_i32_0 = arith.constant 0 : i32
    %c0_i32_1 = arith.constant 0 : i32
    return %c0_i32, %c0_i32_0 : i32, i32
  }
  func.func @transform_8(%arg0: i32) -> (i32, i32) {
    %c0_i32 = arith.constant 0 : i32
    %c0_i32_0 = arith.constant 0 : i32
    %c0_i32_1 = arith.constant 0 : i32
    return %c0_i32, %c0_i32_0 : i32, i32
  }
  func.func @transform_9(%arg0: i32) -> (i32, i32) {
    %c0_i32 = arith.constant 0 : i32
    %c0_i32_0 = arith.constant 0 : i32
    %c0_i32_1 = arith.constant 0 : i32
    return %c0_i32, %c0_i32_0 : i32, i32
  }
  func.func @transform_10(%arg0: i32) -> (i32, i32) {
    %c0_i32 = arith.constant 0 : i32
    %c0_i32_0 = arith.constant 0 : i32
    %c0_i32_1 = arith.constant 0 : i32
    return %c0_i32, %c0_i32_0 : i32, i32
  }
  func.func @transform_11(%arg0: i32) -> (i32, i32) {
    %c0_i32 = arith.constant 0 : i32
    %c0_i32_0 = arith.constant 0 : i32
    %c0_i32_1 = arith.constant 0 : i32
    return %c0_i32, %c0_i32_0 : i32, i32
  }
  func.func @transform_12(%arg0: i32) -> (i32, i32) {
    %c0_i32 = arith.constant 0 : i32
    %c0_i32_0 = arith.constant 0 : i32
    %c0_i32_1 = arith.constant 0 : i32
    return %c0_i32, %c0_i32_0 : i32, i32
  }
  func.func @transform_13(%arg0: i32) -> (i32, i32) {
    %c0_i32 = arith.constant 0 : i32
    %c0_i32_0 = arith.constant 0 : i32
    %c0_i32_1 = arith.constant 0 : i32
    return %c0_i32, %c0_i32_0 : i32, i32
  }
  func.func @transform_14(%arg0: i32) -> (i32, i32, i32) {
    %c0_i32 = arith.constant 0 : i32
    %c0_i32_0 = arith.constant 0 : i32
    %c0_i32_1 = arith.constant 0 : i32
    return %arg0, %c0_i32, %c0_i32_0 : i32, i32, i32
  }
}

</mosaic_0001>

<bundles_post_ra>
// kernel: tpu_custom_call.1
= control target key start
LH: loop header
LB: loop body
LE: loop exit
PB: predicated region body
PF: predicated region fallthrough
CT: control target
= control target key end

     0   :  { %s2113_s0 = inlined_call_operand.vmem [shape: f32[2,8,32], index: 0, kind: input, shape index: {}]   ;;  %s2114_s1 = inlined_call_operand.vmem [shape: f32[1,32], index: 1, kind: input, shape index: {}]   ;;  %s2115_s2 = inlined_call_operand.vmem [shape: f32[1,32], index: 2, kind: input, shape index: {}]   ;;  %s2116_s3 = inlined_call_operand.vmem [shape: bf16[32,96], index: 3, kind: input, shape index: {}]   ;;  %s2117_s4 = inlined_call_operand.vmem [shape: f32[1,32], index: 4, kind: input, shape index: {}]   ;;  %s2118_s5 = inlined_call_operand.vmem [shape: f32[1,32], index: 5, kind: input, shape index: {}]   ;;  %s2119_s6 = inlined_call_operand.vmem [shape: bf16[32,32], index: 6, kind: input, shape index: {}]   ;;  %s2120_s7 = inlined_call_operand.vmem [shape: f32[1,32], index: 7, kind: input, shape index: {}]   ;;  %s2121_s8 = inlined_call_operand.vmem [shape: f32[1,32], index: 8, kind: input, shape index: {}]   ;;  %s2122_s9 = inlined_call_operand.vmem [shape: f32[1,32], index: 9, kind: input, shape index: {}]   ;;  %s2123_s10 = inlined_call_operand.vmem [shape: bf16[32,128], index: 10, kind: input, shape index: {}]   ;;  %s2124_s11 = inlined_call_operand.vmem [shape: f32[1,128], index: 11, kind: input, shape index: {}]   ;;  %s2125_s12 = inlined_call_operand.vmem [shape: bf16[128,32], index: 12, kind: input, shape index: {}]   ;;  %s2126_s13 = inlined_call_operand.vmem [shape: f32[1,32], index: 13, kind: input, shape index: {}]   ;;  %s2127_s14 = inlined_call_operand.hbm [shape: f32[2,8,32], index: 14, kind: output, shape index: {}]  }
   0x1   :  { %2128 = sst [smem:[#allocation7_spill]] %s2113_s0 }
   0x2   :  { %2129 = sst [smem:[#allocation8_spill]] %s2114_s1 }
   0x3   :  { %2130 = sst [smem:[#allocation9_spill]] %s2115_s2 }
   0x4   :  { %2131 = sst [smem:[#allocation10_spill]] %s2116_s3 }
   0x5   :  { %19 = vsyncpa [#allocation5], 0 }
   0x6   :  { %21 = vsyncpa [#allocation5 + $0x1], 0  ;;  %s1845_s29 = smov 0   ;;  %s1847_s30 = smov 0  }
   0x7   :  { %s1849_s15 = smov 0   ;;  %s1851_s16 = smov 0  }
   0x8 LB: > { %s1866_s17 = sadd.s32 4294967295, %s1751_s16   ;;  %s1421_s18 = sadd.s32 4294967294, %s1751_s16   ;;  %s1751_s16 = sphi %s1851_s16, %s2141_s16   ;;  %s1747_s15 = sphi %s1849_s15, %s2140_s15   ;;  %s1743_s30 = sphi %s1847_s30, %s2139_s30   ;;  %s1739_s29 = sphi %s1845_s29, %s2138_s29  }
   0x9   : > { %s1870_s19 = sadd.s32 1, %s1751_s16   ;;  %s333_s20 = sadd.s32 1, %s1747_s15 }
   0xa   : > { %s330_s21 = ssub.s32 %s1751_s16, %s1870_s19  ;;  %p343_p0 = scmp.ne.s32.totalorder %s1747_s15, %s1743_s30 }
   0xb   : > { %p331_p1 = scmp.eq.s32.totalorder %s330_s21, 0  ;;  %p344_p2 = scmp.eq.s32.totalorder %s1866_s17, 1 }
   0xc   : > { %p349_p3 = scmp.ne.s32.totalorder %s1743_s30, %s1739_s29  ;;  %p350_p4 = scmp.eq.s32.totalorder %s1421_s18, 1 }
   0xd   : > { %s1881_s22 = scalar_select %p331_p1, %s1747_s15, %s333_s20  }
   0xe   : > { %p1883_p5 = por %p344_p2, %p343_p0  ;;  %p1887_p6 = por %p350_p4, %p349_p3 }
   0xf   : > { %p1424_p7 = scmp.ge.s32.totalorder %s1751_s16, 1  ;;  %p414_p8 = scmp.lt.s32.totalorder %s1751_s16, 3 }
  0x11   : > { %p415_p9 = pnand %p1424_p7, %p414_p8 }
  0x12   : > { %p459_p10 = scmp.lt.s32.totalorder (!%p415_p9), %s1866_s17, 1  ;;  %s2134_s0 = sld [smem:[#allocation7_spill]] (!%p415_p9) }
  0x13   : > { %418 = sbr.rel (%p415_p9) target bundleno = 2481 (0x9b1), region = 76  ;;  %s2135_s3 = sld [smem:[#allocation10_spill]] (!%p415_p9) }
  0x14   : > { %s2136_s1 = sld [smem:[#allocation8_spill]] (!%p415_p9)  ;;  %s1756_s27 = smov (!%p415_p9), 120  }
  0x15   : > { %s2137_s2 = sld [smem:[#allocation9_spill]] (!%p415_p9)  ;;  %s1757_s28 = smov (!%p415_p9), 88  }
  0x16   : > { %s1759_s20 = smov (!%p415_p9), 112   ;;  %s1760_s21 = smov (!%p415_p9), 72  }
  0x18   : > { %s460_s25 = scalar_select %p459_p10, %s1866_s17, 1  ;;  %vm467_vm0 = vcmask 261120   ;;  %v1753_v8 = vmov 0.0   ;;  %vm1754_vm1 = vmmov 0   ;;  %v1432_v20 = vld [vmem:[%s2117_s4] ss:$0 sm:$0xff] }
  0x19   : > { %v1653_v7 = vld [vmem:[%s2135_s3 + $0x8] sm:$0xff]   ;;  %1506 = vmatprep.subr.bf16.mxu0 %v1753_v8  ;;  %1510 = vmatprep.mubr.msk.bf16.mxu0 %vm1754_vm1, %v1753_v8  ;;  %v1654_v9 = vld [vmem:[%s2135_s3] sm:$0xff]   ;;  %vm580_vm2 = vcmask 64512   ;;  %vm648_vm3 = vcmask 1043456   ;;  %vm693_vm4 = vcmask 60416   ;;  %vm816_vm5 = vcmask 126016  }
  0x1a   : > { %s1426_s26 = sshll.u32 %s460_s25, 3  ;;  %1507 = vmatpush3.bf16.msra.mxu0 %v1653_v7  ;;  %1526 = vmatprep.subr.bf16.mxu1 %v1753_v8  ;;  %v1427_v14 = vld [vmem:[%s2136_s1] ss:$0 sm:$0xff]  ;;  %s1761_s25 = smov 104   ;;  %vm938_vm6 = vcmask 191616   ;;  %vm1060_vm7 = vcmask 257216  }
  0x1b   : > { %s462_s18 = scalar_lea.vmem %s2134_s0, %s1426_s26  ;;  %1508 = vmatprep.subr.bf16.mxu0 %v1753_v8  ;;  %1528 = vmatprep.mubr.msk.bf16.mxu1 %vm1754_vm1, %v1753_v8  ;;  %v1428_v16 = vld [vmem:[%s2137_s2] ss:$0 sm:$0xff]  ;;  %s1755_s26 = smov 96  }
  0x1c   : > { %v1898_v0 = vld [vmem:[%s462_s18] sm:$0xff]  ;;  %s1758_s18 = smov 80  }
  0x1d   : > { %v468_v1 = vsel %vm467_vm0, %v1898_v0, 0.0  ;;  %v1433_v63 = vld [vmem:[%s2118_s5] ss:$0 sm:$0xff] }
  0x1e   : > { %469 = vadd.xlane.f32.xlu0 %v468_v1  ;;  %1509 = vmatpush3.bf16.msra.mxu0 %v1654_v9 }
  0x1f   : > { %1514 = vmatprep.subr.bf16.mxu0 %v1753_v8 }
  0xa7   : > { %v470_v2 = vpop.xlane.xlu0 %469 }
  0xa8   : > { %v472_v3 = vmul.f32 0.03125, %v470_v2 }
  0xaa   : > { %v473_v4 = vsub.f32 %v1898_v0, %v472_v3 }
  0xac   : > { %v474_v5 = vmul.f32 %v473_v4, %v473_v4 }
  0xae   : > { %v475_v6 = vsel %vm467_vm0, %v474_v5, 0.0 }
  0xaf   : > { %476 = vadd.xlane.f32.xlu0 %v475_v6 }
 0x138   : > { %v477_v10 = vpop.xlane.xlu0 %476 }
 0x139   : > { %v478_v11 = vmul.f32 0.03125, %v477_v10 }
 0x13b   : > { %v479_v12 = vadd.f32 1e-05, %v478_v11 }
 0x13d   : > { %1667 = vrsqrt.f32 %v479_v12 }
 0x14a   : > { %v1668_v13 = vpop.eup %1667 }
 0x14b   : > { %v481_v15 = vmul.f32 %v1668_v13, %v473_v4 }
 0x14d   : > { %v488_v17 = vmul.f32 %v1427_v14, %v481_v15 }
 0x14f   : > { %v495_v18 = vadd.f32 %v1428_v16, %v488_v17 }
 0x151   : > { %v496_v19 = vpack.c.bf16 %v495_v18, %v495_v18 }
 0x153   : > { %1511 = vmatmul.mubr.msk.bf16.vlgmr.msra.gmra.mxu0 %vm467_vm0, %v496_v19 }
 0x154   : > { %1516 = vmatprep.mubr.msk.bf16.mxu0 %vm1754_vm1, %v1753_v8 }
 0x213   : > { %v1930_v21 = vpop.f32.mrf.mxu0 }
 0x214   : > { %v564_v22 = vadd.f32 %v1432_v20, %v1930_v21  ;;  %v566_v23 = vpack.c.bf16 %v1930_v21, %v1930_v21 }
 0x215   : > { %v1512_v24 = vpop.f32.mrf.mxu0 }
 0x216   : > { %v565_v25 = vpack.c.bf16 %v564_v22, %v564_v22  ;;  %578 = vrot.lane.b32.xlu1 %v566_v23, %s1755_s26 }
 0x217   : > { %v553_v26 = vpop.f32.mrf.mxu0 }
 0x218   : > { %696 = vrot.lane.b32.xlu0 %v565_v25, %s1756_s27  ;;  %s1466_s27 = sshll.u32 %s1866_s17, 7 }
 0x219   : > { %v1513_v27 = vpop.f32.mrf.mxu0  ;;  %s2071_s2 = scalar_lea.hbm %s2127_s14, %s1466_s27 }
 0x21a   : > { %698 = vrot.lane.b32.xlu1 %v566_v23, %s1757_s28  ;;  %s1762_s28 = smov 64  }
 0x21e   : > { %820 = vrot.lane.b32.xlu1 %v566_v23, %s1758_s18  ;;  %s1763_s18 = smov 56  }
 0x222   : > { %818 = vrot.lane.b32.xlu1 %v565_v25, %s1759_s20  ;;  %s1764_s20 = smov 48  }
 0x226   : > { %942 = vrot.lane.b32.xlu1 %v566_v23, %s1760_s21  ;;  %s1765_s21 = smov 40  }
 0x22a   : > { %940 = vrot.lane.b32.xlu1 %v565_v25, %s1761_s25  ;;  %s1766_s25 = smov 8  }
 0x288   : > { %v579_v28 = vpop.permute.xlu1 %578 }
 0x289   : > { %v585_v29 = vsel %vm580_vm2, %v579_v28, 0 }
 0x28a   : > { %1515 = vmatpush3.bf16.xpose.msra.mxu0 %v585_v29  ;;  %v697_v33 = vpop.permute.xlu0 %696 }
 0x28b   : > { %1520 = vmatprep.subr.bf16.mxu0 %v1753_v8 }
 0x28c   : > { %v699_v30 = vpop.permute.xlu1 %698 }
 0x28d   : > { %v704_v31 = vsel %vm580_vm2, %v699_v30, 0 }
 0x28e   : > { %1527 = vmatpush3.bf16.xpose.msra.mxu1 %v704_v31 }
 0x28f   : > { %1538 = vmatprep.subr.bf16.mxu1 %v1753_v8 }
 0x290   : > { %v821_v32 = vpop.permute.xlu1 %820 }
 0x291   : > { %1517 = vmatmul.mubr.msk.bf16.vlgmr.msra.gmra.mxu0 %vm580_vm2, %v565_v25  ;;  %v826_v35 = vsel %vm580_vm2, %v821_v32, 0 }
 0x292   : > { %1522 = vmatprep.mubr.msk.bf16.mxu0 %vm1754_vm1, %v1753_v8 }
 0x294   : > { %v819_v34 = vpop.permute.xlu1 %818 }
 0x295   : > { %1529 = vmatmul.mubr.msk.bf16.vlgmr.msra.gmra.mxu1 %vm580_vm2, %v697_v33 }
 0x296   : > { %1539 = vmatpush3.bf16.xpose.msra.mxu1 %v826_v35  ;;  %1540 = vmatprep.mubr.msk.bf16.mxu1 %vm1754_vm1, %v1753_v8 }
 0x297   : > { %1550 = vmatprep.subr.bf16.mxu1 %v1753_v8 }
 0x298   : > { %v943_v36 = vpop.permute.xlu1 %942 }
 0x299   : > { %v948_v37 = vsel %vm580_vm2, %v943_v36, 0 }
 0x29c   : > { %v941_v38 = vpop.permute.xlu1 %940 }
 0x29d   : > { %1541 = vmatmul.mubr.msk.bf16.vlgmr.msra.gmra.mxu1 %vm580_vm2, %v819_v34 }
 0x29e   : > { %1551 = vmatpush3.bf16.xpose.msra.mxu1 %v948_v37  ;;  %1552 = vmatprep.mubr.msk.bf16.mxu1 %vm1754_vm1, %v1753_v8 }
 0x29f   : > { %1562 = vmatprep.subr.bf16.mxu1 %v1753_v8 }
 0x2a5   : > { %1553 = vmatmul.mubr.msk.bf16.vlgmr.msra.gmra.mxu1 %vm580_vm2, %v941_v38 }
 0x2a6   : > { %1566 = vmatprep.mubr.msk.bf16.mxu1 %vm1754_vm1, %v1753_v8 }
 0x351   : > { %v621_v39 = vpop.f32.mrf.mxu0 }
 0x352   : > { %v627_v40 = vmul.f32 0.35355338, %v621_v39 }
 0x353   : > { %v1518_v41 = vpop.f32.mrf.mxu0 }
 0x354   : > { %v628_v42 = vsel %vm580_vm2, %v627_v40, -inf }
 0x355   : > { %v740_v43 = vpop.f32.mrf.mxu1  ;;  %629 = vmax.xlane.f32.xlu1 %v628_v42  ;;  %v624_v44 = vpop.f32.mrf.mxu0 }
 0x356   : > { %v746_v45 = vmul.f32 0.35355338, %v740_v43 }
 0x357   : > { %v1519_v46 = vpop.f32.mrf.mxu0  ;;  %v1530_v47 = vpop.f32.mrf.mxu1 }
 0x358   : > { %v747_v48 = vsel %vm580_vm2, %v746_v45, -inf }
 0x359   : > { %748 = vmax.xlane.f32.xlu0 %v747_v48  ;;  %v743_v49 = vpop.f32.mrf.mxu1 }
 0x35b   : > { %v1531_v50 = vpop.f32.mrf.mxu1 }
 0x35d   : > { %v862_v51 = vpop.f32.mrf.mxu1 }
 0x35e   : > { %v868_v52 = vmul.f32 0.35355338, %v862_v51 }
 0x35f   : > { %v1542_v53 = vpop.f32.mrf.mxu1 }
 0x360   : > { %v869_v54 = vsel %vm580_vm2, %v868_v52, -inf }
 0x361   : > { %v865_v55 = vpop.f32.mrf.mxu1  ;;  %870 = vmax.xlane.f32.xlu1 %v869_v54 }
 0x363   : > { %v1543_v56 = vpop.f32.mrf.mxu1 }
 0x365   : > { %v984_v57 = vpop.f32.mrf.mxu1 }
 0x366   : > { %v990_v58 = vmul.f32 0.35355338, %v984_v57 }
 0x367   : > { %v1554_v59 = vpop.f32.mrf.mxu1 }
 0x368   : > { %v991_v60 = vsel %vm580_vm2, %v990_v58, -inf }
 0x369   : > { %992 = vmax.xlane.f32.xlu0 %v991_v60  ;;  %v987_v61 = vpop.f32.mrf.mxu1 }
 0x36b   : > { %v1555_v62 = vpop.f32.mrf.mxu1 }
 0x372   : > { %572 = vrot.lane.b32.xlu1 %v1433_v63, %s1762_s28  ;;  %v1655_v63 = vld [vmem:[%s2119_s6 + $0x8] sm:$0xff]  }
 0x373   : > { %1563 = vmatpush3.bf16.msra.mxu1 %v1655_v63 }
 0x374   : > { %1564 = vmatprep.subr.bf16.mxu1 %v1753_v8 }
 0x3de   : > { %v630_v1 = vpop.xlane.xlu1 %629 }
 0x3df   : > { %v631_v2 = vsub.f32 %v627_v40, %v630_v1 }
 0x3e1   : > { %632 = vst.msk [vmem:[#allocation2] sm:$0xff] %vm580_vm2, %v631_v2  ;;  %v1656_v2 = vld [vmem:[%s2119_s6] sm:$0xff]  }
 0x3e2   : > { %v749_v3 = vpop.xlane.xlu0 %748  ;;  %1565 = vmatpush3.bf16.msra.mxu1 %v1656_v2 }
 0x3e3   : > { %v750_v4 = vsub.f32 %v746_v45, %v749_v3  ;;  %1578 = vmatprep.subr.bf16.mxu1 %v1753_v8 }
 0x3e8   : > { %v633_v5 = vld [vmem:[#allocation2] sm:$0xff] }
 0x3e9   : > { %v634_v6 = vmul.f32 1.442695, %v633_v5  ;;  %751 = vst.msk [vmem:[#allocation2] sm:$0xff] %vm580_vm2, %v750_v4 }
 0x3ea   : > { %v871_v7 = vpop.xlane.xlu1 %870 }
 0x3eb   : > { %1669 = vpow2.f32 %v634_v6  ;;  %v872_v10 = vsub.f32 %v868_v52, %v871_v7 }
 0x3ee   : > { %v573_v9 = vpop.permute.xlu1 %572 }
 0x3ef   : > { %v575_v11 = vadd.f32 %v573_v9, %v1930_v21 }
 0x3f0   : > { %v752_v12 = vld [vmem:[#allocation2] sm:$0xff] }
 0x3f1   : > { %v753_v13 = vmul.f32 1.442695, %v752_v12  ;;  %873 = vst.msk [vmem:[#allocation2] sm:$0xff] %vm580_vm2, %v872_v10  ;;  %v576_v14 = vpack.c.bf16 %v575_v11, %v575_v11 }
 0x3f2   : > { %v993_v15 = vpop.xlane.xlu0 %992 }
 0x3f3   : > { %1671 = vpow2.f32 %v753_v13  ;;  %761 = vrot.lane.b32.xlu1 %v576_v14, %s1763_s18  ;;  %v994_v16 = vsub.f32 %v990_v58, %v993_v15 }
 0x3f7   : > { %883 = vrot.lane.b32.xlu1 %v576_v14, %s1764_s20  ;;  %s1767_s20 = smov 16  }
 0x3f8   : > { %v1670_v17 = vpop.eup %1669  ;;  %v874_v18 = vld [vmem:[#allocation2] sm:$0xff] }
 0x3f9   : > { %v875_v19 = vmul.f32 1.442695, %v874_v18  ;;  %995 = vst.msk [vmem:[#allocation2] sm:$0xff] %vm580_vm2, %v994_v16  ;;  %v636_v20 = vsel %vm580_vm2, %v1670_v17, 0.0 }
 0x3fa   : > { %637 = vadd.xlane.f32.xlu0 %v636_v20 }
 0x3fb   : > { %1673 = vpow2.f32 %v875_v19  ;;  %1005 = vrot.lane.b32.xlu1 %v576_v14, %s1765_s21  ;;  %s1768_s21 = smov 24  }
 0x400   : > { %v1672_v21 = vpop.eup %1671  ;;  %v996_v22 = vld [vmem:[#allocation2] sm:$0xff] }
 0x401   : > { %v755_v23 = vsel %vm580_vm2, %v1672_v21, 0.0  ;;  %v997_v24 = vmul.f32 1.442695, %v996_v22 }
 0x402   : > { %756 = vadd.xlane.f32.xlu0 %v755_v23 }
 0x403   : > { %1675 = vpow2.f32 %v997_v24 }
 0x408   : > { %v1674_v25 = vpop.eup %1673 }
 0x409   : > { %v877_v26 = vsel %vm580_vm2, %v1674_v25, 0.0 }
 0x40a   : > { %878 = vadd.xlane.f32.xlu0 %v877_v26 }
 0x410   : > { %v1676_v27 = vpop.eup %1675 }
 0x411   : > { %v999_v28 = vsel %vm580_vm2, %v1676_v27, 0.0 }
 0x412   : > { %1000 = vadd.xlane.f32.xlu0 %v999_v28 }
 0x428   : > { %643 = vrot.lane.b32.xlu0 %v576_v14, %s1762_s28 }
 0x465   : > { %v762_v37 = vpop.permute.xlu1 %761 }
 0x466   : > { %v767_v40 = vsel %vm648_vm3, %v762_v37, 0  ;;  %v1450_v37 = vld [vmem:[%s2122_s9] ss:$0 sm:$0xff] }
 0x469   : > { %v884_v42 = vpop.permute.xlu1 %883 }
 0x46a   : > { %v889_v45 = vsel %vm648_vm3, %v884_v42, 0  ;;  %v1660_v42 = vld [vmem:[%s2125_s12 + $0x30] sm:$0xff]  }
 0x46d   : > { %v1006_v47 = vpop.permute.xlu1 %1005 }
 0x46e   : > { %v1011_v50 = vsel %vm648_vm3, %v1006_v47, 0  ;;  %v1665_v47 = vld [vmem:[%s2125_s12 + $0x8] sm:$0xff]  }
 0x483   : > { %v638_v29 = vpop.xlane.xlu0 %637 }
 0x484   : > { %1677 = vrcp.f32 %v638_v29 }
 0x48b   : > { %v757_v30 = vpop.xlane.xlu0 %756 }
 0x48c   : > { %1679 = vrcp.f32 %v757_v30  ;;  %v1657_v30 = vld [vmem:[%s2123_s10 + $0x8] sm:$0xff]  }
 0x491   : > { %v1678_v32 = vpop.eup %1677 }
 0x492   : > { %v640_v34 = vmul.f32 %v1678_v32, %v1670_v17  ;;  %v1445_v17 = vld [vmem:[%s2120_s7] ss:$0 sm:$0xff] }
 0x493   : > { %v879_v31 = vpop.xlane.xlu0 %878 }
 0x494   : > { %1681 = vrcp.f32 %v879_v31  ;;  %v641_v38 = vpack.c.bf16 %v640_v34, %v640_v34 }
 0x499   : > { %v1680_v39 = vpop.eup %1679 }
 0x49a   : > { %v759_v41 = vmul.f32 %v1680_v39, %v1672_v21 }
 0x49b   : > { %v1001_v33 = vpop.xlane.xlu0 %1000 }
 0x49c   : > { %1683 = vrcp.f32 %v1001_v33  ;;  %v760_v43 = vpack.c.bf16 %v759_v41, %v759_v41  ;;  %v1659_v41 = vld [vmem:[%s2125_s12 + $0x38] sm:$0xff]  }
 0x49f   : > { %v644_v35 = vpop.permute.xlu0 %643 }
 0x4a0   : > { %v650_v36 = vsel %vm648_vm3, %v644_v35, 0  ;;  %v1449_v35 = vld [vmem:[%s2121_s8] ss:$0 sm:$0xff] }
 0x4a1   : > { %1521 = vmatpush3.bf16.msra.mxu0 %v650_v36  ;;  %v1682_v44 = vpop.eup %1681 }
 0x4a2   : > { %1532 = vmatprep.subr.bf16.mxu0 %v1753_v8  ;;  %v881_v46 = vmul.f32 %v1682_v44, %v1674_v25  ;;  %v1662_v44 = vld [vmem:[%s2125_s12 + $0x20] sm:$0xff]  }
 0x4a4   : > { %1523 = vmatmul.mubr.msk.bf16.vlgmr.msra.gmra.mxu0 %vm580_vm2, %v641_v38  ;;  %v882_v48 = vpack.c.bf16 %v881_v46, %v881_v46  ;;  %v1664_v46 = vld [vmem:[%s2125_s12 + $0x10] sm:$0xff]  }
 0x4a5   : > { %1533 = vmatpush3.bf16.msra.mxu0 %v767_v40  ;;  %1534 = vmatprep.mubr.msk.bf16.mxu0 %vm1754_vm1, %v1753_v8 }
 0x4a6   : > { %1544 = vmatprep.subr.bf16.mxu0 %v1753_v8 }
 0x4a9   : > { %v1684_v49 = vpop.eup %1683 }
 0x4aa   : > { %v1003_v51 = vmul.f32 %v1684_v49, %v1676_v27  ;;  %v1451_v49 = vld [vmem:[%s2124_s11] ss:$0 sm:$0xff] }
 0x4ac   : > { %1535 = vmatmul.mubr.msk.bf16.vlgmr.msra.gmra.mxu0 %vm580_vm2, %v760_v43  ;;  %v1004_v52 = vpack.c.bf16 %v1003_v51, %v1003_v51  ;;  %v1661_v43 = vld [vmem:[%s2125_s12 + $0x28] sm:$0xff]  }
 0x4ad   : > { %1545 = vmatpush3.bf16.msra.mxu0 %v889_v45  ;;  %1546 = vmatprep.mubr.msk.bf16.mxu0 %vm1754_vm1, %v1753_v8  ;;  %v1663_v45 = vld [vmem:[%s2125_s12 + $0x18] sm:$0xff]  }
 0x4ae   : > { %1556 = vmatprep.subr.bf16.mxu0 %v1753_v8 }
 0x4b4   : > { %1547 = vmatmul.mubr.msk.bf16.vlgmr.msra.gmra.mxu0 %vm580_vm2, %v882_v48  ;;  %v1666_v48 = vld [vmem:[%s2125_s12] sm:$0xff]  }
 0x4b5   : > { %1557 = vmatpush3.bf16.msra.mxu0 %v1011_v50  ;;  %1558 = vmatprep.mubr.msk.bf16.mxu0 %vm1754_vm1, %v1753_v8 }
 0x4b6   : > { %1570 = vmatprep.subr.bf16.mxu0 %v1753_v8 }
 0x4bc   : > { %1559 = vmatmul.mubr.msk.bf16.vlgmr.msra.gmra.mxu0 %vm580_vm2, %v1004_v52 }
 0x4bd   : > { %1574 = vmatprep.mubr.msk.bf16.mxu0 %vm1754_vm1, %v1753_v8  ;;  %1571 = vmatpush3.bf16.msra.mxu0 %v1657_v30 }
 0x4be   : > { %1572 = vmatprep.subr.bf16.mxu0 %v1753_v8 }
 0x564   : > { %v686_v53 = vpop.f32.mrf.mxu0 }
 0x565   : > { %v692_v54 = vpack.c.bf16 %v686_v53, %v686_v53 }
 0x566   : > { %v1524_v55 = vpop.f32.mrf.mxu0 }
 0x567   : > { %694 = vst.msk [vmem:[#allocation3] sm:$0xf] %vm693_vm4, %v692_v54 }
 0x568   : > { %v689_v56 = vpop.f32.mrf.mxu0 }
 0x56a   : > { %v1525_v57 = vpop.f32.mrf.mxu0 }
 0x56c   : > { %v803_v58 = vpop.f32.mrf.mxu0 }
 0x56d   : > { %v1469_v59 = vpack.c.bf16 %v803_v58, %v803_v58 }
 0x56e   : > { %v1536_v60 = vpop.f32.mrf.mxu0 }
 0x56f   : > { %813 = vrot.lane.b32.xlu1 %v1469_v59, %s1766_s25  ;;  %s1769_s25 = smov [#allocation4]  }
 0x570   : > { %v806_v61 = vpop.f32.mrf.mxu0  ;;  %s1695_s26 = sshll.u32 %s1769_s25, 4  ;;  %s1696_s26 = int_to_ptr.vmem [resolvable:$false] %s1695_s26 }
 0x571   : > { %v1456_v61 = vld [vmem:[%s2126_s13] ss:$0 sm:$0xff]  ;;  %s1697_s1 = scalar_lea.vmem %s1696_s26, 256 }
 0x572   : > { %v1537_v62 = vpop.f32.mrf.mxu0 }
 0x574   : > { %v925_v1 = vpop.f32.mrf.mxu0 }
 0x575   : > { %v1470_v3 = vpack.c.bf16 %v925_v1, %v925_v1 }
 0x576   : > { %v1548_v4 = vpop.f32.mrf.mxu0 }
 0x577   : > { %935 = vrot.lane.b32.xlu1 %v1470_v3, %s1767_s20 }
 0x578   : > { %v928_v5 = vpop.f32.mrf.mxu0 }
 0x57a   : > { %v1549_v6 = vpop.f32.mrf.mxu0 }
 0x57c   : > { %v1047_v7 = vpop.f32.mrf.mxu0 }
 0x57d   : > { %v1471_v9 = vpack.c.bf16 %v1047_v7, %v1047_v7 }
 0x57e   : > { %v1560_v10 = vpop.f32.mrf.mxu0 }
 0x57f   : > { %1057 = vrot.lane.b32.xlu1 %v1471_v9, %s1768_s21  ;;  %s456_s21 = sand.u32 1, %s1743_s30  }
 0x580   : > { %v1050_v11 = vpop.f32.mrf.mxu0  ;;  %s1425_s0 = sshll.u32 %s456_s21, 3  ;;  %s1349_s17 = scalar_lea.sflag [#allocation5], %s456_s21 }
 0x581   : > { %s458_s28 = scalar_lea.vmem [#allocation4], %s1425_s0 }
 0x582   : > { %v1561_v12 = vpop.f32.mrf.mxu0  ;;  %s1362_s18 = sshll.u32 %s458_s28, 4  ;;  %s2073_s18 = int_to_ptr.vmem [resolvable:$true] %s1362_s18 }
 0x583   : > { %s1691_s0 = scalar_lea.vmem %s2073_s18, 128  ;;  %p1698_p0 = scmp.lt.s32.totalorder %s2073_s18, %s1696_s26 }
 0x584   : > { %p1692_p11 = scmp.ne.s32.totalorder %s2073_s18, %s1691_s0  ;;  %p1699_p1 = scmp.lt.s32.totalorder %s1697_s1, %s1691_s0 }
 0x586   : > { %p1693_p12 = pnand %p1692_p11, %p1883_p5  ;;  %p1700_p2 = por %p1699_p1, %p1698_p0 }
 0x588   : > { %p1694_p13 = pneg %p1693_p12 }
 0x58a   : > { %p1701_p3 = pnand %p1700_p2, %p1694_p13 }
 0x5e1   : > { %v814_v13 = vpop.permute.xlu1 %813 }
 0x5e2   : > { %817 = vst.msk [vmem:[#allocation3] sm:$0xf] %vm816_vm5, %v814_v13 }
 0x5e9   : > { %v936_v14 = vpop.permute.xlu1 %935 }
 0x5ea   : > { %939 = vst.msk [vmem:[#allocation3] sm:$0xf] %vm938_vm6, %v936_v14 }
 0x5f1   : > { %v1058_v15 = vpop.permute.xlu1 %1057 }
 0x5f2   : > { %1061 = vst.msk [vmem:[#allocation3] sm:$0xf] %vm1060_vm7, %v1058_v15 }
 0x5f9   : > { %v1062_v16 = vld [vmem:[#allocation3] sm:$0xf] }
 0x5fa   : > { %1567 = vmatmul.mubr.msk.bf16.vlgmr.msra.gmra.mxu1 %vm467_vm0, %v1062_v16 }
 0x5fb   : > { %1594 = vmatprep.mubr.msk.bf16.mxu1 %vm1754_vm1, %v1753_v8  ;;  %1579 = vmatpush3.bf16.msra.mxu1 %v1659_v41 }
 0x5fc   : > { %1580 = vmatprep.subr.bf16.mxu1 %v1753_v8 }
 0x5ff   : > { %1581 = vmatpush3.bf16.msra.mxu1 %v1660_v42 }
 0x600   : > { %1582 = vmatprep.subr.bf16.mxu1 %v1753_v8 }
 0x603   : > { %1583 = vmatpush3.bf16.msra.mxu1 %v1661_v43 }
 0x604   : > { %1584 = vmatprep.subr.bf16.mxu1 %v1753_v8 }
 0x607   : > { %1585 = vmatpush3.bf16.msra.mxu1 %v1662_v44 }
 0x608   : > { %1586 = vmatprep.subr.bf16.mxu1 %v1753_v8 }
 0x60b   : > { %1587 = vmatpush3.bf16.msra.mxu1 %v1663_v45 }
 0x60c   : > { %1588 = vmatprep.subr.bf16.mxu1 %v1753_v8 }
 0x60f   : > { %1589 = vmatpush3.bf16.msra.mxu1 %v1664_v46 }
 0x610   : > { %1590 = vmatprep.subr.bf16.mxu1 %v1753_v8 }
 0x613   : > { %1591 = vmatpush3.bf16.msra.mxu1 %v1665_v47 }
 0x614   : > { %1592 = vmatprep.subr.bf16.mxu1 %v1753_v8 }
 0x617   : > { %1593 = vmatpush3.bf16.msra.mxu1 %v1666_v48 }
 0x6ba   : > { %v1123_v18 = vpop.f32.mrf.mxu1 }
 0x6bb   : > { %v1124_v19 = vadd.f32 %v1445_v17, %v1123_v18 }
 0x6bc   : > { %v1568_v20 = vpop.f32.mrf.mxu1 }
 0x6bd   : > { %v2008_v21 = vadd.f32 %v1124_v19, %v1898_v0  ;;  %v1658_v0 = vld [vmem:[%s2123_s10] sm:$0xff]  }
 0x6be   : > { %v1126_v22 = vpop.f32.mrf.mxu1  ;;  %1573 = vmatpush3.bf16.msra.mxu0 %v1658_v0 }
 0x6bf   : > { %v1132_v23 = vsel %vm467_vm0, %v2008_v21, 0.0 }
 0x6c0   : > { %1133 = vadd.xlane.f32.xlu0 %v1132_v23  ;;  %v1569_v24 = vpop.f32.mrf.mxu1 }
 0x749   : > { %v1134_v25 = vpop.xlane.xlu0 %1133 }
 0x74a   : > { %v1135_v26 = vmul.f32 0.03125, %v1134_v25 }
 0x74c   : > { %v1136_v27 = vsub.f32 %v2008_v21, %v1135_v26 }
 0x74e   : > { %v1137_v28 = vmul.f32 %v1136_v27, %v1136_v27 }
 0x750   : > { %v1138_v29 = vsel %vm467_vm0, %v1137_v28, 0.0 }
 0x751   : > { %1139 = vadd.xlane.f32.xlu1 %v1138_v29 }
 0x7da   : > { %v1140_v31 = vpop.xlane.xlu1 %1139 }
 0x7db   : > { %v1141_v32 = vmul.f32 0.03125, %v1140_v31 }
 0x7dd   : > { %v1142_v33 = vadd.f32 1e-05, %v1141_v32 }
 0x7df   : > { %1685 = vrsqrt.f32 %v1142_v33 }
 0x7ec   : > { %v1686_v34 = vpop.eup %1685 }
 0x7ed   : > { %v1144_v36 = vmul.f32 %v1686_v34, %v1136_v27 }
 0x7ef   : > { %v1151_v38 = vmul.f32 %v1449_v35, %v1144_v36 }
 0x7f1   : > { %v1158_v39 = vadd.f32 %v1450_v37, %v1151_v38 }
 0x7f3   : > { %v1159_v40 = vpack.c.bf16 %v1158_v39, %v1158_v39 }
 0x7f5   : > { %1575 = vmatmul.mubr.msk.bf16.vlgmr.msra.gmra.mxu0 %vm467_vm0, %v1159_v40 }
 0x8b5   : > { %v1220_v50 = vpop.f32.mrf.mxu0 }
 0x8b6   : > { %v1221_v51 = vadd.f32 %v1451_v49, %v1220_v50 }
 0x8b7   : > { %v1576_v52 = vpop.f32.mrf.mxu0 }
 0x8b8   : > { %v1455_v53 = vmul.f32 -1.702, %v1221_v51 }
 0x8b9   : > { %v1223_v54 = vpop.f32.mrf.mxu0 }
 0x8ba   : > { %v1228_v55 = vmul.f32 1.442695, %v1455_v53 }
 0x8bb   : > { %v1577_v56 = vpop.f32.mrf.mxu0 }
 0x8bc   : > { %1687 = vpow2.f32 %v1228_v55 }
 0x8c9   : > { %v1688_v8 = vpop.eup %1687 }
 0x8ca   : > { %v1230_v57 = vadd.f32 1.0, %v1688_v8 }
 0x8cc   : > { %1689 = vrcp.f32 %v1230_v57 }
 0x8d9   : > { %v1690_v58 = vpop.eup %1689 }
 0x8da   : > { %v1233_v59 = vmul.f32 %v1690_v58, %v1221_v51 }
 0x8dc   : > { %v1234_v60 = vpack.c.bf16 %v1233_v59, %v1233_v59 }
 0x8de   : > { %1595 = vmatmul.mubr.bf16.vlgmr.msra.gmra.mxu1 %v1234_v60 }
 0x99e   : > { %v1340_v62 = vpop.f32.mrf.mxu1 }
 0x99f   : > { %v1341_v63 = vadd.f32 %v1456_v61, %v1340_v62 }
 0x9a0   : > { %v1596_v1 = vpop.f32.mrf.mxu1 }
 0x9a1   : > { %v1346_v2 = vadd.f32 %v1341_v63, %v2008_v21 }
 0x9a2   : > { %v1343_v3 = vpop.f32.mrf.mxu1 }
 0x9a3   : > { %1347 = vst.msk [vmem:[%s458_s28] sm:$0xff] %vm467_vm0, %v1346_v2 }
 0x9a4   : > { %v1597_v4 = vpop.f32.mrf.mxu1 }
 0x9a5   : > { %1704 = shalt.err (!%p1701_p3)
}
 0x9a6   : > { %s1705_s27 = scalar_lea.hbm %s2071_s2, 128  ;;  %s1709_s20 = scalar_lea.hbm %s2127_s14, 256 }
 0x9a7   : > { %p1706_p4 = scmp.ne.s32.totalorder %s2071_s2, %s1705_s27  ;;  %p1710_p9 = scmp.lt.s32.totalorder %s2071_s2, %s2127_s14 }
 0x9a8   : > { %p1711_p10 = scmp.lt.s32.totalorder %s1709_s20, %s1705_s27 }
 0x9a9   : > { %p1707_p7 = pnand %p1706_p4, %p1883_p5 }
 0x9aa   : > { %p1712_p11 = por %p1711_p10, %p1710_p9 }
 0x9ab   : > { %p1708_p8 = pneg %p1707_p7 }
 0x9ad   : > { %p1713_p12 = pnand %p1712_p11, %p1708_p8 }
 0x9af   : > { %1716 = shalt.err (!%p1713_p12)
}
 0x9b0   : > { %1598 = dma.vmem_to_hbm [thread:$0]  (%p1883_p5), %s2073_s18, 128, %s2071_s2, %s1349_s17  }
 0x9b1 PF: > { %p1604_p13 = scmp.ge.s32.totalorder %s1751_s16, 2  ;;  %s1374_s0 = sand.u32 1, %s1739_s29  }
 0x9b2   : > { %s1375_s3 = scalar_lea.sflag [#allocation5], %s1374_s0 }
 0x9b3   : > { %p1601_p0 = pnand %p1604_p13, %p1887_p6 }
 0x9b5   : > { %p1602_p1 = pneg %p1601_p0 }
 0x9b7   : > { %1734 = dma.done.wait (%p1602_p1), %s1375_s3, 128  }
 0x9b8   : > { %1736 = vsyncadd (%p1602_p1), %s1375_s3, 4294967168  ;;  %p24_p2 = scmp.ge.s32.totalorder %s1870_s19, 4   ;;  %s2138_s29 = smov %s1743_s30 }
 0x9b9   : > { %s2139_s30 = smov %s1747_s15  ;;  %s2140_s15 = smov %s1881_s22 }
 0x9ba   : > { %s2141_s16 = smov %s1870_s19  ;;  %26 = sbr.rel (!%p24_p2) target bundleno = 8 (0x8), region = 111 }
 0x9bf   :  { %1380 = vsyncpa [#allocation5], 1 }
 0x9c0   :  { %1382 = vsyncpa [#allocation5 + $0x1], 1 }

// kernel: tpu_custom_call.1
= control target key start
LH: loop header
LB: loop body
LE: loop exit
PB: predicated region body
PF: predicated region fallthrough
CT: control target
= control target key end

     0   :  { %s2113_s0 = inlined_call_operand.vmem [shape: f32[2,8,32], index: 0, kind: input, shape index: {}]   ;;  %s2114_s1 = inlined_call_operand.vmem [shape: f32[1,32], index: 1, kind: input, shape index: {}]   ;;  %s2115_s2 = inlined_call_operand.vmem [shape: f32[1,32], index: 2, kind: input, shape index: {}]   ;;  %s2116_s3 = inlined_call_operand.vmem [shape: bf16[32,96], index: 3, kind: input, shape index: {}]   ;;  %s2117_s4 = inlined_call_operand.vmem [shape: f32[1,32], index: 4, kind: input, shape index: {}]   ;;  %s2118_s5 = inlined_call_operand.vmem [shape: f32[1,32], index: 5, kind: input, shape index: {}]   ;;  %s2119_s6 = inlined_call_operand.vmem [shape: bf16[32,32], index: 6, kind: input, shape index: {}]   ;;  %s2120_s7 = inlined_call_operand.vmem [shape: f32[1,32], index: 7, kind: input, shape index: {}]   ;;  %s2121_s8 = inlined_call_operand.vmem [shape: f32[1,32], index: 8, kind: input, shape index: {}]   ;;  %s2122_s9 = inlined_call_operand.vmem [shape: f32[1,32], index: 9, kind: input, shape index: {}]   ;;  %s2123_s10 = inlined_call_operand.vmem [shape: bf16[32,128], index: 10, kind: input, shape index: {}]   ;;  %s2124_s11 = inlined_call_operand.vmem [shape: f32[1,128], index: 11, kind: input, shape index: {}]   ;;  %s2125_s12 = inlined_call_operand.vmem [shape: bf16[128,32], index: 12, kind: input, shape index: {}]   ;;  %s2126_s13 = inlined_call_operand.vmem [shape: f32[1,32], index: 13, kind: input, shape index: {}]   ;;  %s2127_s14 = inlined_call_operand.hbm [shape: f32[2,8,32], index: 14, kind: output, shape index: {}]  }
   0x1   :  { %2128 = sst [smem:[#allocation7_spill]] %s2113_s0 }
   0x2   :  { %2129 = sst [smem:[#allocation8_spill]] %s2114_s1 }
   0x3   :  { %2130 = sst [smem:[#allocation9_spill]] %s2115_s2 }
   0x4   :  { %2131 = sst [smem:[#allocation10_spill]] %s2116_s3 }
   0x5   :  { %19 = vsyncpa [#allocation5], 0 }
   0x6   :  { %21 = vsyncpa [#allocation5 + $0x1], 0  ;;  %s1845_s29 = smov 0   ;;  %s1847_s30 = smov 0  }
   0x7   :  { %s1849_s15 = smov 0   ;;  %s1851_s16 = smov 0  }
   0x8 LB: > { %s1866_s17 = sadd.s32 4294967295, %s1751_s16   ;;  %s1421_s18 = sadd.s32 4294967294, %s1751_s16   ;;  %s1751_s16 = sphi %s1851_s16, %s2141_s16   ;;  %s1747_s15 = sphi %s1849_s15, %s2140_s15   ;;  %s1743_s30 = sphi %s1847_s30, %s2139_s30   ;;  %s1739_s29 = sphi %s1845_s29, %s2138_s29  }
   0x9   : > { %s1870_s19 = sadd.s32 1, %s1751_s16   ;;  %s333_s20 = sadd.s32 1, %s1747_s15 }
   0xa   : > { %s330_s21 = ssub.s32 %s1751_s16, %s1870_s19  ;;  %p343_p0 = scmp.ne.s32.totalorder %s1747_s15, %s1743_s30 }
   0xb   : > { %p331_p1 = scmp.eq.s32.totalorder %s330_s21, 0  ;;  %p344_p2 = scmp.eq.s32.totalorder %s1866_s17, 1 }
   0xc   : > { %p349_p3 = scmp.ne.s32.totalorder %s1743_s30, %s1739_s29  ;;  %p350_p4 = scmp.eq.s32.totalorder %s1421_s18, 1 }
   0xd   : > { %s1881_s22 = scalar_select %p331_p1, %s1747_s15, %s333_s20  }
   0xe   : > { %p1883_p5 = por %p344_p2, %p343_p0  ;;  %p1887_p6 = por %p350_p4, %p349_p3 }
   0xf   : > { %p1424_p7 = scmp.ge.s32.totalorder %s1751_s16, 1  ;;  %p414_p8 = scmp.lt.s32.totalorder %s1751_s16, 3 }
  0x11   : > { %p415_p9 = pnand %p1424_p7, %p414_p8 }
  0x12   : > { %p459_p10 = scmp.lt.s32.totalorder (!%p415_p9), %s1866_s17, 1  ;;  %s2134_s0 = sld [smem:[#allocation7_spill]] (!%p415_p9) }
  0x13   : > { %418 = sbr.rel (%p415_p9) target bundleno = 2481 (0x9b1), region = 76  ;;  %s2135_s3 = sld [smem:[#allocation10_spill]] (!%p415_p9) }
  0x14   : > { %s2136_s1 = sld [smem:[#allocation8_spill]] (!%p415_p9)  ;;  %s1756_s27 = smov (!%p415_p9), 120  }
  0x15   : > { %s2137_s2 = sld [smem:[#allocation9_spill]] (!%p415_p9)  ;;  %s1757_s28 = smov (!%p415_p9), 88  }
  0x16   : > { %s1759_s20 = smov (!%p415_p9), 112   ;;  %s1760_s21 = smov (!%p415_p9), 72  }
  0x18   : > { %s460_s25 = scalar_select %p459_p10, %s1866_s17, 1  ;;  %vm467_vm0 = vcmask 261120   ;;  %v1753_v8 = vmov 0.0   ;;  %vm1754_vm1 = vmmov 0   ;;  %v1432_v20 = vld [vmem:[%s2117_s4] ss:$0 sm:$0xff] }
  0x19   : > { %v1653_v7 = vld [vmem:[%s2135_s3 + $0x8] sm:$0xff]   ;;  %1506 = vmatprep.subr.bf16.mxu0 %v1753_v8  ;;  %1510 = vmatprep.mubr.msk.bf16.mxu0 %vm1754_vm1, %v1753_v8  ;;  %v1654_v9 = vld [vmem:[%s2135_s3] sm:$0xff]   ;;  %vm580_vm2 = vcmask 64512   ;;  %vm648_vm3 = vcmask 1043456   ;;  %vm693_vm4 = vcmask 60416   ;;  %vm816_vm5 = vcmask 126016  }
  0x1a   : > { %s1426_s26 = sshll.u32 %s460_s25, 3  ;;  %1507 = vmatpush3.bf16.msra.mxu0 %v1653_v7  ;;  %1526 = vmatprep.subr.bf16.mxu1 %v1753_v8  ;;  %v1427_v14 = vld [vmem:[%s2136_s1] ss:$0 sm:$0xff]  ;;  %s1761_s25 = smov 104   ;;  %vm938_vm6 = vcmask 191616   ;;  %vm1060_vm7 = vcmask 257216  }
  0x1b   : > { %s462_s18 = scalar_lea.vmem %s2134_s0, %s1426_s26  ;;  %1508 = vmatprep.subr.bf16.mxu0 %v1753_v8  ;;  %1528 = vmatprep.mubr.msk.bf16.mxu1 %vm1754_vm1, %v1753_v8  ;;  %v1428_v16 = vld [vmem:[%s2137_s2] ss:$0 sm:$0xff]  ;;  %s1755_s26 = smov 96  }
  0x1c   : > { %v1898_v0 = vld [vmem:[%s462_s18] sm:$0xff]  ;;  %s1758_s18 = smov 80  }
  0x1d   : > { %v468_v1 = vsel %vm467_vm0, %v1898_v0, 0.0  ;;  %v1433_v63 = vld [vmem:[%s2118_s5] ss:$0 sm:$0xff] }
  0x1e   : > { %469 = vadd.xlane.f32.xlu0 %v468_v1  ;;  %1509 = vmatpush3.bf16.msra.mxu0 %v1654_v9 }
  0x1f   : > { %1514 = vmatprep.subr.bf16.mxu0 %v1753_v8 }
  0xa7   : > { %v470_v2 = vpop.xlane.xlu0 %469 }
  0xa8   : > { %v472_v3 = vmul.f32 0.03125, %v470_v2 }
  0xaa   : > { %v473_v4 = vsub.f32 %v1898_v0, %v472_v3 }
  0xac   : > { %v474_v5 = vmul.f32 %v473_v4, %v473_v4 }
  0xae   : > { %v475_v6 = vsel %vm467_vm0, %v474_v5, 0.0 }
  0xaf   : > { %476 = vadd.xlane.f32.xlu0 %v475_v6 }
 0x138   : > { %v477_v10 = vpop.xlane.xlu0 %476 }
 0x139   : > { %v478_v11 = vmul.f32 0.03125, %v477_v10 }
 0x13b   : > { %v479_v12 = vadd.f32 1e-05, %v478_v11 }
 0x13d   : > { %1667 = vrsqrt.f32 %v479_v12 }
 0x14a   : > { %v1668_v13 = vpop.eup %1667 }
 0x14b   : > { %v481_v15 = vmul.f32 %v1668_v13, %v473_v4 }
 0x14d   : > { %v488_v17 = vmul.f32 %v1427_v14, %v481_v15 }
 0x14f   : > { %v495_v18 = vadd.f32 %v1428_v16, %v488_v17 }
 0x151   : > { %v496_v19 = vpack.c.bf16 %v495_v18, %v495_v18 }
 0x153   : > { %1511 = vmatmul.mubr.msk.bf16.vlgmr.msra.gmra.mxu0 %vm467_vm0, %v496_v19 }
 0x154   : > { %1516 = vmatprep.mubr.msk.bf16.mxu0 %vm1754_vm1, %v1753_v8 }
 0x213   : > { %v1930_v21 = vpop.f32.mrf.mxu0 }
 0x214   : > { %v564_v22 = vadd.f32 %v1432_v20, %v1930_v21  ;;  %v566_v23 = vpack.c.bf16 %v1930_v21, %v1930_v21 }
 0x215   : > { %v1512_v24 = vpop.f32.mrf.mxu0 }
 0x216   : > { %v565_v25 = vpack.c.bf16 %v564_v22, %v564_v22  ;;  %578 = vrot.lane.b32.xlu1 %v566_v23, %s1755_s26 }
 0x217   : > { %v553_v26 = vpop.f32.mrf.mxu0 }
 0x218   : > { %696 = vrot.lane.b32.xlu0 %v565_v25, %s1756_s27  ;;  %s1466_s27 = sshll.u32 %s1866_s17, 7 }
 0x219   : > { %v1513_v27 = vpop.f32.mrf.mxu0  ;;  %s2071_s2 = scalar_lea.hbm %s2127_s14, %s1466_s27 }
 0x21a   : > { %698 = vrot.lane.b32.xlu1 %v566_v23, %s1757_s28  ;;  %s1762_s28 = smov 64  }
 0x21e   : > { %820 = vrot.lane.b32.xlu1 %v566_v23, %s1758_s18  ;;  %s1763_s18 = smov 56  }
 0x222   : > { %818 = vrot.lane.b32.xlu1 %v565_v25, %s1759_s20  ;;  %s1764_s20 = smov 48  }
 0x226   : > { %942 = vrot.lane.b32.xlu1 %v566_v23, %s1760_s21  ;;  %s1765_s21 = smov 40  }
 0x22a   : > { %940 = vrot.lane.b32.xlu1 %v565_v25, %s1761_s25  ;;  %s1766_s25 = smov 8  }
 0x288   : > { %v579_v28 = vpop.permute.xlu1 %578 }
 0x289   : > { %v585_v29 = vsel %vm580_vm2, %v579_v28, 0 }
 0x28a   : > { %1515 = vmatpush3.bf16.xpose.msra.mxu0 %v585_v29  ;;  %v697_v33 = vpop.permute.xlu0 %696 }
 0x28b   : > { %1520 = vmatprep.subr.bf16.mxu0 %v1753_v8 }
 0x28c   : > { %v699_v30 = vpop.permute.xlu1 %698 }
 0x28d   : > { %v704_v31 = vsel %vm580_vm2, %v699_v30, 0 }
 0x28e   : > { %1527 = vmatpush3.bf16.xpose.msra.mxu1 %v704_v31 }
 0x28f   : > { %1538 = vmatprep.subr.bf16.mxu1 %v1753_v8 }
 0x290   : > { %v821_v32 = vpop.permute.xlu1 %820 }
 0x291   : > { %1517 = vmatmul.mubr.msk.bf16.vlgmr.msra.gmra.mxu0 %vm580_vm2, %v565_v25  ;;  %v826_v35 = vsel %vm580_vm2, %v821_v32, 0 }
 0x292   : > { %1522 = vmatprep.mubr.msk.bf16.mxu0 %vm1754_vm1, %v1753_v8 }
 0x294   : > { %v819_v34 = vpop.permute.xlu1 %818 }
 0x295   : > { %1529 = vmatmul.mubr.msk.bf16.vlgmr.msra.gmra.mxu1 %vm580_vm2, %v697_v33 }
 0x296   : > { %1539 = vmatpush3.bf16.xpose.msra.mxu1 %v826_v35  ;;  %1540 = vmatprep.mubr.msk.bf16.mxu1 %vm1754_vm1, %v1753_v8 }
 0x297   : > { %1550 = vmatprep.subr.bf16.mxu1 %v1753_v8 }
 0x298   : > { %v943_v36 = vpop.permute.xlu1 %942 }
 0x299   : > { %v948_v37 = vsel %vm580_vm2, %v943_v36, 0 }
 0x29c   : > { %v941_v38 = vpop.permute.xlu1 %940 }
 0x29d   : > { %1541 = vmatmul.mubr.msk.bf16.vlgmr.msra.gmra.mxu1 %vm580_vm2, %v819_v34 }
 0x29e   : > { %1551 = vmatpush3.bf16.xpose.msra.mxu1 %v948_v37  ;;  %1552 = vmatprep.mubr.msk.bf16.mxu1 %vm1754_vm1, %v1753_v8 }
 0x29f   : > { %1562 = vmatprep.subr.bf16.mxu1 %v1753_v8 }
 0x2a5   : > { %1553 = vmatmul.mubr.msk.bf16.vlgmr.msra.gmra.mxu1 %vm580_vm2, %v941_v38 }
 0x2a6   : > { %1566 = vmatprep.mubr.msk.bf16.mxu1 %vm1754_vm1, %v1753_v8 }
 0x351   : > { %v621_v39 = vpop.f32.mrf.mxu0 }
 0x352   : > { %v627_v40 = vmul.f32 0.35355338, %v621_v39 }
 0x353   : > { %v1518_v41 = vpop.f32.mrf.mxu0 }
 0x354   : > { %v628_v42 = vsel %vm580_vm2, %v627_v40, -inf }
 0x355   : > { %v740_v43 = vpop.f32.mrf.mxu1  ;;  %629 = vmax.xlane.f32.xlu1 %v628_v42  ;;  %v624_v44 = vpop.f32.mrf.mxu0 }
 0x356   : > { %v746_v45 = vmul.f32 0.35355338, %v740_v43 }
 0x357   : > { %v1519_v46 = vpop.f32.mrf.mxu0  ;;  %v1530_v47 = vpop.f32.mrf.mxu1 }
 0x358   : > { %v747_v48 = vsel %vm580_vm2, %v746_v45, -inf }
 0x359   : > { %748 = vmax.xlane.f32.xlu0 %v747_v48  ;;  %v743_v49 = vpop.f32.mrf.mxu1 }
 0x35b   : > { %v1531_v50 = vpop.f32.mrf.mxu1 }
 0x35d   : > { %v862_v51 = vpop.f32.mrf.mxu1 }
 0x35e   : > { %v868_v52 = vmul.f32 0.35355338, %v862_v51 }
 0x35f   : > { %v1542_v53 = vpop.f32.mrf.mxu1 }
 0x360   : > { %v869_v54 = vsel %vm580_vm2, %v868_v52, -inf }
 0x361   : > { %v865_v55 = vpop.f32.mrf.mxu1  ;;  %870 = vmax.xlane.f32.xlu1 %v869_v54 }
 0x363   : > { %v1543_v56 = vpop.f32.mrf.mxu1 }
 0x365   : > { %v984_v57 = vpop.f32.mrf.mxu1 }
 0x366   : > { %v990_v58 = vmul.f32 0.35355338, %v984_v57 }
 0x367   : > { %v1554_v59 = vpop.f32.mrf.mxu1 }
 0x368   : > { %v991_v60 = vsel %vm580_vm2, %v990_v58, -inf }
 0x369   : > { %992 = vmax.xlane.f32.xlu0 %v991_v60  ;;  %v987_v61 = vpop.f32.mrf.mxu1 }
 0x36b   : > { %v1555_v62 = vpop.f32.mrf.mxu1 }
 0x372   : > { %572 = vrot.lane.b32.xlu1 %v1433_v63, %s1762_s28  ;;  %v1655_v63 = vld [vmem:[%s2119_s6 + $0x8] sm:$0xff]  }
 0x373   : > { %1563 = vmatpush3.bf16.msra.mxu1 %v1655_v63 }
 0x374   : > { %1564 = vmatprep.subr.bf16.mxu1 %v1753_v8 }
 0x3de   : > { %v630_v1 = vpop.xlane.xlu1 %629 }
 0x3df   : > { %v631_v2 = vsub.f32 %v627_v40, %v630_v1 }
 0x3e1   : > { %632 = vst.msk [vmem:[#allocation2] sm:$0xff] %vm580_vm2, %v631_v2  ;;  %v1656_v2 = vld [vmem:[%s2119_s6] sm:$0xff]  }
 0x3e2   : > { %v749_v3 = vpop.xlane.xlu0 %748  ;;  %1565 = vmatpush3.bf16.msra.mxu1 %v1656_v2 }
 0x3e3   : > { %v750_v4 = vsub.f32 %v746_v45, %v749_v3  ;;  %1578 = vmatprep.subr.bf16.mxu1 %v1753_v8 }
 0x3e8   : > { %v633_v5 = vld [vmem:[#allocation2] sm:$0xff] }
 0x3e9   : > { %v634_v6 = vmul.f32 1.442695, %v633_v5  ;;  %751 = vst.msk [vmem:[#allocation2] sm:$0xff] %vm580_vm2, %v750_v4 }
 0x3ea   : > { %v871_v7 = vpop.xlane.xlu1 %870 }
 0x3eb   : > { %1669 = vpow2.f32 %v634_v6  ;;  %v872_v10 = vsub.f32 %v868_v52, %v871_v7 }
 0x3ee   : > { %v573_v9 = vpop.permute.xlu1 %572 }
 0x3ef   : > { %v575_v11 = vadd.f32 %v573_v9, %v1930_v21 }
 0x3f0   : > { %v752_v12 = vld [vmem:[#allocation2] sm:$0xff] }
 0x3f1   : > { %v753_v13 = vmul.f32 1.442695, %v752_v12  ;;  %873 = vst.msk [vmem:[#allocation2] sm:$0xff] %vm580_vm2, %v872_v10  ;;  %v576_v14 = vpack.c.bf16 %v575_v11, %v575_v11 }
 0x3f2   : > { %v993_v15 = vpop.xlane.xlu0 %992 }
 0x3f3   : > { %1671 = vpow2.f32 %v753_v13  ;;  %761 = vrot.lane.b32.xlu1 %v576_v14, %s1763_s18  ;;  %v994_v16 = vsub.f32 %v990_v58, %v993_v15 }
 0x3f7   : > { %883 = vrot.lane.b32.xlu1 %v576_v14, %s1764_s20  ;;  %s1767_s20 = smov 16  }
 0x3f8   : > { %v1670_v17 = vpop.eup %1669  ;;  %v874_v18 = vld [vmem:[#allocation2] sm:$0xff] }
 0x3f9   : > { %v875_v19 = vmul.f32 1.442695, %v874_v18  ;;  %995 = vst.msk [vmem:[#allocation2] sm:$0xff] %vm580_vm2, %v994_v16  ;;  %v636_v20 = vsel %vm580_vm2, %v1670_v17, 0.0 }
 0x3fa   : > { %637 = vadd.xlane.f32.xlu0 %v636_v20 }
 0x3fb   : > { %1673 = vpow2.f32 %v875_v19  ;;  %1005 = vrot.lane.b32.xlu1 %v576_v14, %s1765_s21  ;;  %s1768_s21 = smov 24  }
 0x400   : > { %v1672_v21 = vpop.eup %1671  ;;  %v996_v22 = vld [vmem:[#allocation2] sm:$0xff] }
 0x401   : > { %v755_v23 = vsel %vm580_vm2, %v1672_v21, 0.0  ;;  %v997_v24 = vmul.f32 1.442695, %v996_v22 }
 0x402   : > { %756 = vadd.xlane.f32.xlu0 %v755_v23 }
 0x403   : > { %1675 = vpow2.f32 %v997_v24 }
 0x408   : > { %v1674_v25 = vpop.eup %1673 }
 0x409   : > { %v877_v26 = vsel %vm580_vm2, %v1674_v25, 0.0 }
 0x40a   : > { %878 = vadd.xlane.f32.xlu0 %v877_v26 }
 0x410   : > { %v1676_v27 = vpop.eup %1675 }
 0x411   : > { %v999_v28 = vsel %vm580_vm2, %v1676_v27, 0.0 }
 0x412   : > { %1000 = vadd.xlane.f32.xlu0 %v999_v28 }
 0x428   : > { %643 = vrot.lane.b32.xlu0 %v576_v14, %s1762_s28 }
 0x465   : > { %v762_v37 = vpop.permute.xlu1 %761 }
 0x466   : > { %v767_v40 = vsel %vm648_vm3, %v762_v37, 0  ;;  %v1450_v37 = vld [vmem:[%s2122_s9] ss:$0 sm:$0xff] }
 0x469   : > { %v884_v42 = vpop.permute.xlu1 %883 }
 0x46a   : > { %v889_v45 = vsel %vm648_vm3, %v884_v42, 0  ;;  %v1660_v42 = vld [vmem:[%s2125_s12 + $0x30] sm:$0xff]  }
 0x46d   : > { %v1006_v47 = vpop.permute.xlu1 %1005 }
 0x46e   : > { %v1011_v50 = vsel %vm648_vm3, %v1006_v47, 0  ;;  %v1665_v47 = vld [vmem:[%s2125_s12 + $0x8] sm:$0xff]  }
 0x483   : > { %v638_v29 = vpop.xlane.xlu0 %637 }
 0x484   : > { %1677 = vrcp.f32 %v638_v29 }
 0x48b   : > { %v757_v30 = vpop.xlane.xlu0 %756 }
 0x48c   : > { %1679 = vrcp.f32 %v757_v30  ;;  %v1657_v30 = vld [vmem:[%s2123_s10 + $0x8] sm:$0xff]  }
 0x491   : > { %v1678_v32 = vpop.eup %1677 }
 0x492   : > { %v640_v34 = vmul.f32 %v1678_v32, %v1670_v17  ;;  %v1445_v17 = vld [vmem:[%s2120_s7] ss:$0 sm:$0xff] }
 0x493   : > { %v879_v31 = vpop.xlane.xlu0 %878 }
 0x494   : > { %1681 = vrcp.f32 %v879_v31  ;;  %v641_v38 = vpack.c.bf16 %v640_v34, %v640_v34 }
 0x499   : > { %v1680_v39 = vpop.eup %1679 }
 0x49a   : > { %v759_v41 = vmul.f32 %v1680_v39, %v1672_v21 }
 0x49b   : > { %v1001_v33 = vpop.xlane.xlu0 %1000 }
 0x49c   : > { %1683 = vrcp.f32 %v1001_v33  ;;  %v760_v43 = vpack.c.bf16 %v759_v41, %v759_v41  ;;  %v1659_v41 = vld [vmem:[%s2125_s12 + $0x38] sm:$0xff]  }
 0x49f   : > { %v644_v35 = vpop.permute.xlu0 %643 }
 0x4a0   : > { %v650_v36 = vsel %vm648_vm3, %v644_v35, 0  ;;  %v1449_v35 = vld [vmem:[%s2121_s8] ss:$0 sm:$0xff] }
 0x4a1   : > { %1521 = vmatpush3.bf16.msra.mxu0 %v650_v36  ;;  %v1682_v44 = vpop.eup %1681 }
 0x4a2   : > { %1532 = vmatprep.subr.bf16.mxu0 %v1753_v8  ;;  %v881_v46 = vmul.f32 %v1682_v44, %v1674_v25  ;;  %v1662_v44 = vld [vmem:[%s2125_s12 + $0x20] sm:$0xff]  }
 0x4a4   : > { %1523 = vmatmul.mubr.msk.bf16.vlgmr.msra.gmra.mxu0 %vm580_vm2, %v641_v38  ;;  %v882_v48 = vpack.c.bf16 %v881_v46, %v881_v46  ;;  %v1664_v46 = vld [vmem:[%s2125_s12 + $0x10] sm:$0xff]  }
 0x4a5   : > { %1533 = vmatpush3.bf16.msra.mxu0 %v767_v40  ;;  %1534 = vmatprep.mubr.msk.bf16.mxu0 %vm1754_vm1, %v1753_v8 }
 0x4a6   : > { %1544 = vmatprep.subr.bf16.mxu0 %v1753_v8 }
 0x4a9   : > { %v1684_v49 = vpop.eup %1683 }
 0x4aa   : > { %v1003_v51 = vmul.f32 %v1684_v49, %v1676_v27  ;;  %v1451_v49 = vld [vmem:[%s2124_s11] ss:$0 sm:$0xff] }
 0x4ac   : > { %1535 = vmatmul.mubr.msk.bf16.vlgmr.msra.gmra.mxu0 %vm580_vm2, %v760_v43  ;;  %v1004_v52 = vpack.c.bf16 %v1003_v51, %v1003_v51  ;;  %v1661_v43 = vld [vmem:[%s2125_s12 + $0x28] sm:$0xff]  }
 0x4ad   : > { %1545 = vmatpush3.bf16.msra.mxu0 %v889_v45  ;;  %1546 = vmatprep.mubr.msk.bf16.mxu0 %vm1754_vm1, %v1753_v8  ;;  %v1663_v45 = vld [vmem:[%s2125_s12 + $0x18] sm:$0xff]  }
 0x4ae   : > { %1556 = vmatprep.subr.bf16.mxu0 %v1753_v8 }
 0x4b4   : > { %1547 = vmatmul.mubr.msk.bf16.vlgmr.msra.gmra.mxu0 %vm580_vm2, %v882_v48  ;;  %v1666_v48 = vld [vmem:[%s2125_s12] sm:$0xff]  }
 0x4b5   : > { %1557 = vmatpush3.bf16.msra.mxu0 %v1011_v50  ;;  %1558 = vmatprep.mubr.msk.bf16.mxu0 %vm1754_vm1, %v1753_v8 }
 0x4b6   : > { %1570 = vmatprep.subr.bf16.mxu0 %v1753_v8 }
 0x4bc   : > { %1559 = vmatmul.mubr.msk.bf16.vlgmr.msra.gmra.mxu0 %vm580_vm2, %v1004_v52 }
 0x4bd   : > { %1574 = vmatprep.mubr.msk.bf16.mxu0 %vm1754_vm1, %v1753_v8  ;;  %1571 = vmatpush3.bf16.msra.mxu0 %v1657_v30 }
 0x4be   : > { %1572 = vmatprep.subr.bf16.mxu0 %v1753_v8 }
 0x564   : > { %v686_v53 = vpop.f32.mrf.mxu0 }
 0x565   : > { %v692_v54 = vpack.c.bf16 %v686_v53, %v686_v53 }
 0x566   : > { %v1524_v55 = vpop.f32.mrf.mxu0 }
 0x567   : > { %694 = vst.msk [vmem:[#allocation3] sm:$0xf] %vm693_vm4, %v692_v54 }
 0x568   : > { %v689_v56 = vpop.f32.mrf.mxu0 }
 0x56a   : > { %v1525_v57 = vpop.f32.mrf.mxu0 }
 0x56c   : > { %v803_v58 = vpop.f32.mrf.mxu0 }
 0x56d   : > { %v1469_v59 = vpack.c.bf16 %v803_v58, %v803_v58 }
 0x56e   : > { %v1536_v60 = vpop.f32.mrf.mxu0 }
 0x56f   : > { %813 = vrot.lane.b32.xlu1 %v1469_v59, %s1766_s25  ;;  %s1769_s25 = smov [#allocation4]  }
 0x570   : > { %v806_v61 = vpop.f32.mrf.mxu0  ;;  %s1695_s26 = sshll.u32 %s1769_s25, 4  ;;  %s1696_s26 = int_to_ptr.vmem [resolvable:$false] %s1695_s26 }
 0x571   : > { %v1456_v61 = vld [vmem:[%s2126_s13] ss:$0 sm:$0xff]  ;;  %s1697_s1 = scalar_lea.vmem %s1696_s26, 256 }
 0x572   : > { %v1537_v62 = vpop.f32.mrf.mxu0 }
 0x574   : > { %v925_v1 = vpop.f32.mrf.mxu0 }
 0x575   : > { %v1470_v3 = vpack.c.bf16 %v925_v1, %v925_v1 }
 0x576   : > { %v1548_v4 = vpop.f32.mrf.mxu0 }
 0x577   : > { %935 = vrot.lane.b32.xlu1 %v1470_v3, %s1767_s20 }
 0x578   : > { %v928_v5 = vpop.f32.mrf.mxu0 }
 0x57a   : > { %v1549_v6 = vpop.f32.mrf.mxu0 }
 0x57c   : > { %v1047_v7 = vpop.f32.mrf.mxu0 }
 0x57d   : > { %v1471_v9 = vpack.c.bf16 %v1047_v7, %v1047_v7 }
 0x57e   : > { %v1560_v10 = vpop.f32.mrf.mxu0 }
 0x57f   : > { %1057 = vrot.lane.b32.xlu1 %v1471_v9, %s1768_s21  ;;  %s456_s21 = sand.u32 1, %s1743_s30  }
 0x580   : > { %v1050_v11 = vpop.f32.mrf.mxu0  ;;  %s1425_s0 = sshll.u32 %s456_s21, 3  ;;  %s1349_s17 = scalar_lea.sflag [#allocation5], %s456_s21 }
 0x581   : > { %s458_s28 = scalar_lea.vmem [#allocation4], %s1425_s0 }
 0x582   : > { %v1561_v12 = vpop.f32.mrf.mxu0  ;;  %s1362_s18 = sshll.u32 %s458_s28, 4  ;;  %s2073_s18 = int_to_ptr.vmem [resolvable:$true] %s1362_s18 }
 0x583   : > { %s1691_s0 = scalar_lea.vmem %s2073_s18, 128  ;;  %p1698_p0 = scmp.lt.s32.totalorder %s2073_s18, %s1696_s26 }
 0x584   : > { %p1692_p11 = scmp.ne.s32.totalorder %s2073_s18, %s1691_s0  ;;  %p1699_p1 = scmp.lt.s32.totalorder %s1697_s1, %s1691_s0 }
 0x586   : > { %p1693_p12 = pnand %p1692_p11, %p1883_p5  ;;  %p1700_p2 = por %p1699_p1, %p1698_p0 }
 0x588   : > { %p1694_p13 = pneg %p1693_p12 }
 0x58a   : > { %p1701_p3 = pnand %p1700_p2, %p1694_p13 }
 0x5e1   : > { %v814_v13 = vpop.permute.xlu1 %813 }
 0x5e2   : > { %817 = vst.msk [vmem:[#allocation3] sm:$0xf] %vm816_vm5, %v814_v13 }
 0x5e9   : > { %v936_v14 = vpop.permute.xlu1 %935 }
 0x5ea   : > { %939 = vst.msk [vmem:[#allocation3] sm:$0xf] %vm938_vm6, %v936_v14 }
 0x5f1   : > { %v1058_v15 = vpop.permute.xlu1 %1057 }
 0x5f2   : > { %1061 = vst.msk [vmem:[#allocation3] sm:$0xf] %vm1060_vm7, %v1058_v15 }
 0x5f9   : > { %v1062_v16 = vld [vmem:[#allocation3] sm:$0xf] }
 0x5fa   : > { %1567 = vmatmul.mubr.msk.bf16.vlgmr.msra.gmra.mxu1 %vm467_vm0, %v1062_v16 }
 0x5fb   : > { %1594 = vmatprep.mubr.msk.bf16.mxu1 %vm1754_vm1, %v1753_v8  ;;  %1579 = vmatpush3.bf16.msra.mxu1 %v1659_v41 }
 0x5fc   : > { %1580 = vmatprep.subr.bf16.mxu1 %v1753_v8 }
 0x5ff   : > { %1581 = vmatpush3.bf16.msra.mxu1 %v1660_v42 }
 0x600   : > { %1582 = vmatprep.subr.bf16.mxu1 %v1753_v8 }
 0x603   : > { %1583 = vmatpush3.bf16.msra.mxu1 %v1661_v43 }
 0x604   : > { %1584 = vmatprep.subr.bf16.mxu1 %v1753_v8 }
 0x607   : > { %1585 = vmatpush3.bf16.msra.mxu1 %v1662_v44 }
 0x608   : > { %1586 = vmatprep.subr.bf16.mxu1 %v1753_v8 }
 0x60b   : > { %1587 = vmatpush3.bf16.msra.mxu1 %v1663_v45 }
 0x60c   : > { %1588 = vmatprep.subr.bf16.mxu1 %v1753_v8 }
 0x60f   : > { %1589 = vmatpush3.bf16.msra.mxu1 %v1664_v46 }
 0x610   : > { %1590 = vmatprep.subr.bf16.mxu1 %v1753_v8 }
 0x613   : > { %1591 = vmatpush3.bf16.msra.mxu1 %v1665_v47 }
 0x614   : > { %1592 = vmatprep.subr.bf16.mxu1 %v1753_v8 }
 0x617   : > { %1593 = vmatpush3.bf16.msra.mxu1 %v1666_v48 }
 0x6ba   : > { %v1123_v18 = vpop.f32.mrf.mxu1 }
 0x6bb   : > { %v1124_v19 = vadd.f32 %v1445_v17, %v1123_v18 }
 0x6bc   : > { %v1568_v20 = vpop.f32.mrf.mxu1 }
 0x6bd   : > { %v2008_v21 = vadd.f32 %v1124_v19, %v1898_v0  ;;  %v1658_v0 = vld [vmem:[%s2123_s10] sm:$0xff]  }
 0x6be   : > { %v1126_v22 = vpop.f32.mrf.mxu1  ;;  %1573 = vmatpush3.bf16.msra.mxu0 %v1658_v0 }
 0x6bf   : > { %v1132_v23 = vsel %vm467_vm0, %v2008_v21, 0.0 }
 0x6c0   : > { %1133 = vadd.xlane.f32.xlu0 %v1132_v23  ;;  %v1569_v24 = vpop.f32.mrf.mxu1 }
 0x749   : > { %v1134_v25 = vpop.xlane.xlu0 %1133 }
 0x74a   : > { %v1135_v26 = vmul.f32 0.03125, %v1134_v25 }
 0x74c   : > { %v1136_v27 = vsub.f32 %v2008_v21, %v1135_v26 }
 0x74e   : > { %v1137_v28 = vmul.f32 %v1136_v27, %v1136_v27 }
 0x750   : > { %v1138_v29 = vsel %vm467_vm0, %v1137_v28, 0.0 }
 0x751   : > { %1139 = vadd.xlane.f32.xlu1 %v1138_v29 }
 0x7da   : > { %v1140_v31 = vpop.xlane.xlu1 %1139 }
 0x7db   : > { %v1141_v32 = vmul.f32 0.03125, %v1140_v31 }
 0x7dd   : > { %v1142_v33 = vadd.f32 1e-05, %v1141_v32 }
 0x7df   : > { %1685 = vrsqrt.f32 %v1142_v33 }
 0x7ec   : > { %v1686_v34 = vpop.eup %1685 }
 0x7ed   : > { %v1144_v36 = vmul.f32 %v1686_v34, %v1136_v27 }
 0x7ef   : > { %v1151_v38 = vmul.f32 %v1449_v35, %v1144_v36 }
 0x7f1   : > { %v1158_v39 = vadd.f32 %v1450_v37, %v1151_v38 }
 0x7f3   : > { %v1159_v40 = vpack.c.bf16 %v1158_v39, %v1158_v39 }
 0x7f5   : > { %1575 = vmatmul.mubr.msk.bf16.vlgmr.msra.gmra.mxu0 %vm467_vm0, %v1159_v40 }
 0x8b5   : > { %v1220_v50 = vpop.f32.mrf.mxu0 }
 0x8b6   : > { %v1221_v51 = vadd.f32 %v1451_v49, %v1220_v50 }
 0x8b7   : > { %v1576_v52 = vpop.f32.mrf.mxu0 }
 0x8b8   : > { %v1455_v53 = vmul.f32 -1.702, %v1221_v51 }
 0x8b9   : > { %v1223_v54 = vpop.f32.mrf.mxu0 }
 0x8ba   : > { %v1228_v55 = vmul.f32 1.442695, %v1455_v53 }
 0x8bb   : > { %v1577_v56 = vpop.f32.mrf.mxu0 }
 0x8bc   : > { %1687 = vpow2.f32 %v1228_v55 }
 0x8c9   : > { %v1688_v8 = vpop.eup %1687 }
 0x8ca   : > { %v1230_v57 = vadd.f32 1.0, %v1688_v8 }
 0x8cc   : > { %1689 = vrcp.f32 %v1230_v57 }
 0x8d9   : > { %v1690_v58 = vpop.eup %1689 }
 0x8da   : > { %v1233_v59 = vmul.f32 %v1690_v58, %v1221_v51 }
 0x8dc   : > { %v1234_v60 = vpack.c.bf16 %v1233_v59, %v1233_v59 }
 0x8de   : > { %1595 = vmatmul.mubr.bf16.vlgmr.msra.gmra.mxu1 %v1234_v60 }
 0x99e   : > { %v1340_v62 = vpop.f32.mrf.mxu1 }
 0x99f   : > { %v1341_v63 = vadd.f32 %v1456_v61, %v1340_v62 }
 0x9a0   : > { %v1596_v1 = vpop.f32.mrf.mxu1 }
 0x9a1   : > { %v1346_v2 = vadd.f32 %v1341_v63, %v2008_v21 }
 0x9a2   : > { %v1343_v3 = vpop.f32.mrf.mxu1 }
 0x9a3   : > { %1347 = vst.msk [vmem:[%s458_s28] sm:$0xff] %vm467_vm0, %v1346_v2 }
 0x9a4   : > { %v1597_v4 = vpop.f32.mrf.mxu1 }
 0x9a5   : > { %1704 = shalt.err (!%p1701_p3)
}
 0x9a6   : > { %s1705_s27 = scalar_lea.hbm %s2071_s2, 128  ;;  %s1709_s20 = scalar_lea.hbm %s2127_s14, 256 }
 0x9a7   : > { %p1706_p4 = scmp.ne.s32.totalorder %s2071_s2, %s1705_s27  ;;  %p1710_p9 = scmp.lt.s32.totalorder %s2071_s2, %s2127_s14 }
 0x9a8   : > { %p1711_p10 = scmp.lt.s32.totalorder %s1709_s20, %s1705_s27 }
 0x9a9   : > { %p1707_p7 = pnand %p1706_p4, %p1883_p5 }
 0x9aa   : > { %p1712_p11 = por %p1711_p10, %p1710_p9 }
 0x9ab   : > { %p1708_p8 = pneg %p1707_p7 }
 0x9ad   : > { %p1713_p12 = pnand %p1712_p11, %p1708_p8 }
 0x9af   : > { %1716 = shalt.err (!%p1713_p12)
}
 0x9b0   : > { %1598 = dma.vmem_to_hbm [thread:$0]  (%p1883_p5), %s2073_s18, 128, %s2071_s2, %s1349_s17  }
 0x9b1 PF: > { %p1604_p13 = scmp.ge.s32.totalorder %s1751_s16, 2  ;;  %s1374_s0 = sand.u32 1, %s1739_s29  }
 0x9b2   : > { %s1375_s3 = scalar_lea.sflag [#allocation5], %s1374_s0 }
 0x9b3   : > { %p1601_p0 = pnand %p1604_p13, %p1887_p6 }
 0x9b5   : > { %p1602_p1 = pneg %p1601_p0 }
 0x9b7   : > { %1734 = dma.done.wait (%p1602_p1), %s1375_s3, 128  }
 0x9b8   : > { %1736 = vsyncadd (%p1602_p1), %s1375_s3, 4294967168  ;;  %p24_p2 = scmp.ge.s32.totalorder %s1870_s19, 4   ;;  %s2138_s29 = smov %s1743_s30 }
 0x9b9   : > { %s2139_s30 = smov %s1747_s15  ;;  %s2140_s15 = smov %s1881_s22 }
 0x9ba   : > { %s2141_s16 = smov %s1870_s19  ;;  %26 = sbr.rel (!%p24_p2) target bundleno = 8 (0x8), region = 111 }
 0x9bf   :  { %1380 = vsyncpa [#allocation5], 1 }
 0x9c0   :  { %1382 = vsyncpa [#allocation5 + $0x1], 1 }

</bundles_post_ra>
